<compile_context>
chip_gen: v6e
topology: v6e:2x2x1
jax: 0.10.0
libtpu: 0.0.40
codegen_flags: <defaults>
</compile_context>

<pallas_src>
import functools

import jax
import jax.numpy as jnp
from jax import lax
from jax.experimental import pallas as pl
from jax.experimental.pallas import tpu as pltpu


def _round_up(x, m):
    return ((x + m - 1) // m) * m


# ----------------------------------------------------------------------------
# One LSTM layer over one time chunk (both directions interleaved).
# ----------------------------------------------------------------------------
def _lstm_layer_kernel(*refs, TC, Bp, H, n_src, n_dir, fuse_pre, unroll):
    it = iter(refs)
    # streamed per-direction views of each source (chunk i for d=0, chunk
    # NC-1-i for d=1), time-major flattened rows (TC*Bp, K)
    src = [[next(it) for _ in range(n_src)] for _ in range(n_dir)]
    mask = [next(it) for _ in range(n_dir)]            # (TC*Bp, 1) chunks
    if fuse_pre:
        pre_w_ref = next(it)                           # (in_dim, H)
        pre_b_ref = next(it)                           # (1, H)
        prelu_ref = next(it)                           # (1, 1)
    wih = [[next(it) for _ in range(n_src)] for _ in range(n_dir)]  # (K, 4H)
    bsum = [next(it) for _ in range(n_dir)]            # (1, 4H)
    whh = [next(it) for _ in range(n_dir)]             # (H, 4H)
    h0 = [next(it) for _ in range(n_dir)]              # (Bp, H)
    c0 = [next(it) for _ in range(n_dir)]
    y_out = [next(it) for _ in range(n_dir)]           # (TC*Bp, H) out chunks
    gx = [next(it) for _ in range(n_dir)]              # VMEM (TC*Bp, 4H)
    h_sc = [next(it) for _ in range(n_dir)]            # VMEM (Bp, H)
    c_sc = [next(it) for _ in range(n_dir)]

    # ---- init recurrent state on the first chunk --------------------------
    @pl.when(pl.program_id(0) == 0)
    def _():
        for d in range(n_dir):
            h_sc[d][...] = h0[d][...]
            c_sc[d][...] = c0[d][...]

    # ---- hoisted input projection for this chunk, straight to VMEM --------
    for d in range(n_dir):
        if fuse_pre:
            a = prelu_ref[...]
            xv = src[d][0][...]
            p = jnp.dot(xv, pre_w_ref[...],
                        preferred_element_type=jnp.float32) + pre_b_ref[...]
            srcs_v = [jnp.where(p >= 0.0, p, a * p)]
        else:
            srcs_v = [src[d][s][...] for s in range(n_src)]
        acc = None
        for sv, w_ref in zip(srcs_v, wih[d]):
            part = jnp.dot(sv, w_ref[...], preferred_element_type=jnp.float32)
            acc = part if acc is None else acc + part
        gx[d][...] = acc + bsum[d][...]

    whh_v = [whh[d][...] for d in range(n_dir)]        # hoist weight loads

    def cell(gates, c_prev):
        # NOTE: production H should be a multiple of 128 so these gate slices
        # are lane-tile aligned.
        i_g = jax.nn.sigmoid(gates[:, 0 * H:1 * H])
        f_g = jax.nn.sigmoid(gates[:, 1 * H:2 * H])
        g_g = jnp.tanh(gates[:, 2 * H:3 * H])
        o_g = jax.nn.sigmoid(gates[:, 3 * H:4 * H])
        c_new = f_g * c_prev + i_g * g_g
        return o_g * jnp.tanh(c_new), c_new

    # ---- interleaved forward / reverse recurrence over the chunk ----------
    def step(s, carry):
        hs = list(carry[:n_dir])
        cs = list(carry[n_dir:])
        for d in range(n_dir):
            loc = s if d == 0 else TC - 1 - s
            row = pl.multiple_of(loc * Bp, Bp)
            gates = (gx[d][pl.ds(row, Bp), :]
                     + jnp.dot(hs[d], whh_v[d],
                               preferred_element_type=jnp.float32))
            h_new, c_new = cell(gates, cs[d])
            m = mask[d][pl.ds(row, Bp), :] > 0.5       # (Bp, 1) bool
            y_out[d][pl.ds(row, Bp), :] = jnp.where(m, h_new, 0.0)
            hs[d] = jnp.where(m, h_new, hs[d])
            cs[d] = jnp.where(m, c_new, cs[d])
        return tuple(hs) + tuple(cs)

    carry0 = (tuple(h_sc[d][...] for d in range(n_dir))
              + tuple(c_sc[d][...] for d in range(n_dir)))
    carry = lax.fori_loop(0, TC, step, carry0, unroll=unroll)
    for d in range(n_dir):
        h_sc[d][...] = carry[d]
        c_sc[d][...] = carry[n_dir + d]


# ----------------------------------------------------------------------------
# post_net: streamed Linear over chunks (chunks are independent -> parallel).
# ----------------------------------------------------------------------------
def _post_kernel(*refs, n_dir):
    it = iter(refs)
    y = [next(it) for _ in range(n_dir)]
    w = [next(it) for _ in range(n_dir)]
    b_ref = next(it)
    out_ref = next(it)
    acc = jnp.dot(y[0][...], w[0][...], preferred_element_type=jnp.float32)
    for d in range(1, n_dir):
        acc = acc + jnp.dot(y[d][...], w[d][...],
                            preferred_element_type=jnp.float32)
    out_ref[...] = acc + b_ref[...]


# ----------------------------------------------------------------------------
# Wrapper
# ----------------------------------------------------------------------------
def mcep_forward(x, lengths, h0, c0, params, cfg, time_chunk=None):
    B, T, in_dim = x.shape
    H = cfg["hidden_dim"]
    L = cfg["num_layers"]
    D = 2 if cfg["bidirectional"] else 1
    out_dim = cfg["out_dim"]

    Bp = _round_up(B, 8)                     # sublane-align batch
    if time_chunk is None:
        # TODO(synk): derive chunk from per-chip VMEM budget (v7x: 64 MiB).
        time_chunk = 64
    TC = min(time_chunk, T)
    T_pad = _round_up(T, TC)
    NC = T_pad // TC
    rows = TC * Bp

    pad_b = Bp - B
    pad_t = T_pad - T
    x_p = jnp.pad(x, ((0, pad_b), (0, pad_t), (0, 0)))
    len_p = jnp.pad(lengths, (0, pad_b))
    h0_p = jnp.pad(h0, ((0, 0), (0, pad_b), (0, 0)))
    c0_p = jnp.pad(c0, ((0, 0), (0, pad_b), (0, 0)))

    # Time-major flattened activations: row index = t * Bp + b.
    x_tm = jnp.transpose(x_p, (1, 0, 2)).reshape(T_pad * Bp, in_dim)
    mask_tm = (jnp.arange(T_pad)[:, None] < len_p[None, :]).astype(jnp.float32)
    mask_tm = mask_tm.reshape(T_pad * Bp, 1)

    def row_map(d):
        if d == 0:
            return lambda i: (i, 0)
        return lambda i: (NC - 1 - i, 0)

    def full_spec(arr):
        nd = arr.ndim
        return pl.BlockSpec(arr.shape, lambda i, _nd=nd: (0,) * _nd)

    def vmem_limit_bytes(src_dims):
        stream = D * sum(src_dims) * rows        # streamed src chunks
        stream += D * rows                       # mask chunks
        stream += D * rows * H                   # y output chunks
        stream *= 4 * 2                          # f32, double-buffered
        scratch = D * rows * 4 * H * 4 + 2 * D * Bp * H * 4
        return int(min(64 << 20, max(32 << 20, 2 * (stream + scratch) + (2 << 20))))

    sources = None                               # per-direction y of prev layer
    for l in range(L):
        fuse_pre = (l == 0)
        n_src = 1 if l == 0 else D
        src_arrays = [x_tm] if l == 0 else sources
        src_dims = [in_dim] if l == 0 else [H] * D

        inputs, in_specs = [], []
        for d in range(D):                       # per-direction source views
            for s in range(n_src):
                inputs.append(src_arrays[s])
                in_specs.append(pl.BlockSpec((rows, src_dims[s]), row_map(d)))
        for d in range(D):                       # per-direction mask views
            inputs.append(mask_tm)
            in_specs.append(pl.BlockSpec((rows, 1), row_map(d)))
        if fuse_pre:
            for arr in (params["pre_W_t"], params["pre_b"], params["prelu_a"]):
                inputs.append(arr)
                in_specs.append(full_spec(arr))
        for d in range(D):
            for s in range(n_src):
                arr = params["wih_t"][l][d][s]
                inputs.append(arr)
                in_specs.append(full_spec(arr))
        for d in range(D):
            arr = params["bsum"][l][d]
            inputs.append(arr)
            in_specs.append(full_spec(arr))
        for d in range(D):
            arr = params["whh_t"][l][d]
            inputs.append(arr)
            in_specs.append(full_spec(arr))
        for d in range(D):
            arr = h0_p[l * D + d]
            inputs.append(arr)
            in_specs.append(full_spec(arr))
        for d in range(D):
            arr = c0_p[l * D + d]
            inputs.append(arr)
            in_specs.append(full_spec(arr))

        out_shape = tuple(jax.ShapeDtypeStruct((T_pad * Bp, H), jnp.float32)
                          for _ in range(D))
        out_specs = tuple(pl.BlockSpec((rows, H), row_map(d)) for d in range(D))
        scratch = ([pltpu.VMEM((rows, 4 * H), jnp.float32) for _ in range(D)]
                   + [pltpu.VMEM((Bp, H), jnp.float32) for _ in range(D)]
                   + [pltpu.VMEM((Bp, H), jnp.float32) for _ in range(D)])

        kernel = functools.partial(_lstm_layer_kernel, TC=TC, Bp=Bp, H=H,
                                   n_src=n_src, n_dir=D, fuse_pre=fuse_pre,
                                   unroll=min(4, TC))
        outs = pl.pallas_call(
            kernel,
            out_shape=out_shape,
            grid_spec=pltpu.PrefetchScalarGridSpec(
                num_scalar_prefetch=0, grid=(NC,),
                in_specs=in_specs, out_specs=out_specs,
                scratch_shapes=scratch),
            compiler_params=pltpu.CompilerParams(
                dimension_semantics=("arbitrary",),
                vmem_limit_bytes=vmem_limit_bytes(src_dims)),
        )(*inputs)
        sources = list(outs) if isinstance(outs, (tuple, list)) else [outs]

    # ---------------- post_net (chunks independent -> "parallel") -----------
    post_inputs, post_specs = [], []
    for d in range(D):
        post_inputs.append(sources[d])
        post_specs.append(pl.BlockSpec((rows, H), lambda i: (i, 0)))
    for d in range(D):
        arr = params["post_W_split"][d]
        post_inputs.append(arr)
        post_specs.append(full_spec(arr))
    post_inputs.append(params["post_b"])
    post_specs.append(full_spec(params["post_b"]))

    out = pl.pallas_call(
        functools.partial(_post_kernel, n_dir=D),
        out_shape=jax.ShapeDtypeStruct((T_pad * Bp, out_dim), jnp.float32),
        grid_spec=pltpu.PrefetchScalarGridSpec(
            num_scalar_prefetch=0, grid=(NC,),
            in_specs=post_specs,
            out_specs=pl.BlockSpec((rows, out_dim), lambda i: (i, 0))),
        compiler_params=pltpu.CompilerParams(
            dimension_semantics=("parallel",),
            vmem_limit_bytes=32 << 20),
    )(*post_inputs)

    out = out.reshape(T_pad, Bp, out_dim).transpose(1, 0, 2)
    return out[:B, :T, :]


# ----------------------------------------------------------------------------
# Pure-JAX reference (same math, no Pallas) for a correctness check
# ----------------------------------------------------------------------------
def ref_forward(x, lengths, params_raw, cfg):
    B, T, _ = x.shape
    H = cfg["hidden_dim"]
    L = cfg["num_layers"]
    D = 2 if cfg["bidirectional"] else 1

    pre = x @ params_raw["pre_W"].T + params_raw["pre_b"]
    a = params_raw["prelu_a"]
    pre = jnp.where(pre >= 0, pre, a * pre)

    mask = (jnp.arange(T)[None, :] < lengths[:, None]).astype(jnp.float32)
    inp = pre
    for l in range(L):
        outs = []
        for d in range(D):
            Wih = params_raw["wih"][l][d]
            Whh = params_raw["whh"][l][d]
            bsum = params_raw["bih"][l][d] + params_raw["bhh"][l][d]
            h = jnp.zeros((B, H), jnp.float32)
            c = jnp.zeros((B, H), jnp.float32)
            ys = [None] * T
            ts = range(T - 1, -1, -1) if d == 1 else range(T)
            for t in ts:
                x_t = inp[:, t, :]
                g = x_t @ Wih.T + h @ Whh.T + bsum
                i = jax.nn.sigmoid(g[:, :H])
                f = jax.nn.sigmoid(g[:, H:2 * H])
                gg = jnp.tanh(g[:, 2 * H:3 * H])
                o = jax.nn.sigmoid(g[:, 3 * H:])
                c_new = f * c + i * gg
                h_new = o * jnp.tanh(c_new)
                m = mask[:, t:t + 1]
                h = m * h_new + (1 - m) * h
                c = m * c_new + (1 - m) * c
                ys[t] = m * h_new
            outs.append(jnp.stack(ys, axis=1))
        inp = jnp.concatenate(outs, axis=-1)
    return inp @ params_raw["post_W"].T + params_raw["post_b"]


# ----------------------------------------------------------------------------
# Deterministic parameter init (PyTorch-style uniform ranges)
# ----------------------------------------------------------------------------
def init_params(key, cfg):
    in_dim, out_dim, H = cfg["in_dim"], cfg["out_dim"], cfg["hidden_dim"]
    L = cfg["num_layers"]
    D = 2 if cfg["bidirectional"] else 1

    def uni(k, shape, fan):
        s = 1.0 / jnp.sqrt(fan)
        return jax.random.uniform(k, shape, jnp.float32, -s, s)

    keys = iter(jax.random.split(key, 4 + 4 * L * D))
    raw = {
        "pre_W": uni(next(keys), (H, in_dim), in_dim),
        "pre_b": uni(next(keys), (H,), in_dim),
        "prelu_a": 0.25,
        "post_W": uni(next(keys), (out_dim, H * D), H * D),
        "post_b": uni(next(keys), (out_dim,), H * D),
        "wih": [], "whh": [], "bih": [], "bhh": [],
    }
    for l in range(L):
        in_l = H if l == 0 else H * D
        wih_l, whh_l, bih_l, bhh_l = [], [], [], []
        for _ in range(D):
            wih_l.append(uni(next(keys), (4 * H, in_l), H))
            whh_l.append(uni(next(keys), (4 * H, H), H))
            bih_l.append(uni(next(keys), (4 * H,), H))
            bhh_l.append(uni(next(keys), (4 * H,), H))
        raw["wih"].append(wih_l)
        raw["whh"].append(whh_l)
        raw["bih"].append(bih_l)
        raw["bhh"].append(bhh_l)

    # Kernel-layout params: pre-transposed weights, per-source split of the
    # input weights (layers>0 have D sources), fused biases, direction-split
    # post_net weights.  TODO(synk): bf16 storage for production.
    kp = {
        "pre_W_t": raw["pre_W"].T,                         # (in_dim, H)
        "pre_b": raw["pre_b"][None, :],                    # (1, H)
        "prelu_a": jnp.full((1, 1), raw["prelu_a"], jnp.float32),
        "wih_t": [], "bsum": [], "whh_t": [],
    }
    for l in range(L):
        n_src = 1 if l == 0 else D
        wih_l, bsum_l, whh_l = [], [], []
        for d in range(D):
            wt = raw["wih"][l][d].T                        # (n_src*H_or_in, 4H)
            wih_l.append([wt[s * H:(s + 1) * H, :] for s in range(n_src)])
            bsum_l.append((raw["bih"][l][d] + raw["bhh"][l][d])[None, :])
            whh_l.append(raw["whh"][l][d].T)               # (H, 4H)
        kp["wih_t"].append(wih_l)
        kp["bsum"].append(bsum_l)
        kp["whh_t"].append(whh_l)
    pwt = raw["post_W"].T                                  # (H*D, out_dim)
    kp["post_W_split"] = [pwt[d * H:(d + 1) * H, :] for d in range(D)]
    kp["post_b"] = raw["post_b"][None, :]
    return raw, kp


# ----------------------------------------------------------------------------
if __name__ == "__main__":
    cfg = dict(in_dim=8, out_dim=6, hidden_dim=16, num_layers=2,
               bidirectional=True)
    B, T = 2, 8
    D = 2 if cfg["bidirectional"] else 1

    key = jax.random.PRNGKey(0)
    k_x, k_p = jax.random.split(key)
    x = jax.random.normal(k_x, (B, T, cfg["in_dim"]), jnp.float32)
    lengths = jnp.array([8, 5], jnp.int32)  # sorted descending (enforce_sorted)

    # init_hidden(batch_size): zeros, shape (num_layers * num_direction, B, H)
    h0 = jnp.zeros((cfg["num_layers"] * D, B, cfg["hidden_dim"]), jnp.float32)
    c0 = jnp.zeros_like(h0)

    raw_params, kernel_params = init_params(k_p, cfg)

    # time_chunk=4 -> 2 time chunks: exercises the chunked grid, the reverse
    # index_map and the h/c carry across grid steps.
    out = mcep_forward(x, lengths, h0, c0, kernel_params, cfg, time_chunk=4)
    out = jax.block_until_ready(out)

    ref = ref_forward(x, lengths, raw_params, cfg)
    assert out.shape == (B, T, cfg["out_dim"])
    assert jnp.allclose(out, ref, atol=1e-3, rtol=1e-3), \
        f"max abs err {jnp.max(jnp.abs(out - ref))}"

    print("KERNEL_OK")
</pallas_src>

<mosaic_0001>
module attributes {stable_mosaic.version = 11 : i64} {
  func.func @_lstm_layer_kernel(%arg0: i32, %arg1: memref<32x8xf32, #tpu.memory_space<vmem>>, %arg2: memref<32x8xf32, #tpu.memory_space<vmem>>, %arg3: memref<32x1xf32, #tpu.memory_space<vmem>>, %arg4: memref<32x1xf32, #tpu.memory_space<vmem>>, %arg5: memref<8x16xf32, #tpu.memory_space<vmem>>, %arg6: memref<1x16xf32, #tpu.memory_space<vmem>>, %arg7: memref<1x1xf32, #tpu.memory_space<vmem>>, %arg8: memref<16x64xf32, #tpu.memory_space<vmem>>, %arg9: memref<16x64xf32, #tpu.memory_space<vmem>>, %arg10: memref<1x64xf32, #tpu.memory_space<vmem>>, %arg11: memref<1x64xf32, #tpu.memory_space<vmem>>, %arg12: memref<16x64xf32, #tpu.memory_space<vmem>>, %arg13: memref<16x64xf32, #tpu.memory_space<vmem>>, %arg14: memref<8x16xf32, #tpu.memory_space<vmem>>, %arg15: memref<8x16xf32, #tpu.memory_space<vmem>>, %arg16: memref<8x16xf32, #tpu.memory_space<vmem>>, %arg17: memref<8x16xf32, #tpu.memory_space<vmem>>, %arg18: memref<32x16xf32, #tpu.memory_space<vmem>>, %arg19: memref<32x16xf32, #tpu.memory_space<vmem>>, %arg20: memref<32x64xf32, #tpu.memory_space<vmem>>, %arg21: memref<32x64xf32, #tpu.memory_space<vmem>>, %arg22: memref<8x16xf32, #tpu.memory_space<vmem>>, %arg23: memref<8x16xf32, #tpu.memory_space<vmem>>, %arg24: memref<8x16xf32, #tpu.memory_space<vmem>>, %arg25: memref<8x16xf32, #tpu.memory_space<vmem>>) attributes {dimension_semantics = [#tpu.dimension_semantics<arbitrary>], iteration_bounds = array<i64: 2>, scalar_prefetch = 0 : i64, scratch_operands = 6 : i64, tpu.core_type = #tpu.core_type<tc>, window_params = [{transform_indices = @transform_0, window_bounds = array<i64: 32, 8>}, {transform_indices = @transform_1, window_bounds = array<i64: 32, 8>}, {transform_indices = @transform_2, window_bounds = array<i64: 32, 1>}, {transform_indices = @transform_3, window_bounds = array<i64: 32, 1>}, {pipeline_mode = #tpu.pipeline_mode<synchronous>, transform_indices = @transform_4, window_bounds = array<i64: 8, 16>}, {pipeline_mode = #tpu.pipeline_mode<synchronous>, transform_indices = @transform_5, window_bounds = array<i64: 1, 16>}, {pipeline_mode = #tpu.pipeline_mode<synchronous>, transform_indices = @transform_6, window_bounds = array<i64: 1, 1>}, {pipeline_mode = #tpu.pipeline_mode<synchronous>, transform_indices = @transform_7, window_bounds = array<i64: 16, 64>}, {pipeline_mode = #tpu.pipeline_mode<synchronous>, transform_indices = @transform_8, window_bounds = array<i64: 16, 64>}, {pipeline_mode = #tpu.pipeline_mode<synchronous>, transform_indices = @transform_9, window_bounds = array<i64: 1, 64>}, {pipeline_mode = #tpu.pipeline_mode<synchronous>, transform_indices = @transform_10, window_bounds = array<i64: 1, 64>}, {pipeline_mode = #tpu.pipeline_mode<synchronous>, transform_indices = @transform_11, window_bounds = array<i64: 16, 64>}, {pipeline_mode = #tpu.pipeline_mode<synchronous>, transform_indices = @transform_12, window_bounds = array<i64: 16, 64>}, {pipeline_mode = #tpu.pipeline_mode<synchronous>, transform_indices = @transform_13, window_bounds = array<i64: 8, 16>}, {pipeline_mode = #tpu.pipeline_mode<synchronous>, transform_indices = @transform_14, window_bounds = array<i64: 8, 16>}, {pipeline_mode = #tpu.pipeline_mode<synchronous>, transform_indices = @transform_15, window_bounds = array<i64: 8, 16>}, {pipeline_mode = #tpu.pipeline_mode<synchronous>, transform_indices = @transform_16, window_bounds = array<i64: 8, 16>}, {transform_indices = @transform_17, window_bounds = array<i64: 32, 16>}, {transform_indices = @transform_18, window_bounds = array<i64: 32, 16>}]} {
    %c0_i32 = arith.constant 0 : i32
    %0 = arith.cmpi eq, %arg0, %c0_i32 : i32
    %1 = arith.extui %0 : i1 to i32
    %c0_i32_0 = arith.constant 0 : i32
    %2 = arith.cmpi ne, %1, %c0_i32_0 : i32
    scf.if %2 {
      %c0_137 = arith.constant 0 : index
      %c0_138 = arith.constant 0 : index
      %429 = vector.load %arg14[%c0_137, %c0_138] : memref<8x16xf32, #tpu.memory_space<vmem>>, vector<8x16xf32>
      %c0_139 = arith.constant 0 : index
      %c0_140 = arith.constant 0 : index
      %430 = vector.load %arg22[%c0_139, %c0_140] : memref<8x16xf32, #tpu.memory_space<vmem>>, vector<8x16xf32>
      tpu.vector_store %arg22[%c0_139, %c0_140], %429 {strides = array<i32>} : memref<8x16xf32, #tpu.memory_space<vmem>>, vector<8x16xf32>,
      %c0_141 = arith.constant 0 : index
      %c0_142 = arith.constant 0 : index
      %431 = vector.load %arg16[%c0_141, %c0_142] : memref<8x16xf32, #tpu.memory_space<vmem>>, vector<8x16xf32>
      %c0_143 = arith.constant 0 : index
      %c0_144 = arith.constant 0 : index
      %432 = vector.load %arg24[%c0_143, %c0_144] : memref<8x16xf32, #tpu.memory_space<vmem>>, vector<8x16xf32>
      tpu.vector_store %arg24[%c0_143, %c0_144], %431 {strides = array<i32>} : memref<8x16xf32, #tpu.memory_space<vmem>>, vector<8x16xf32>,
      %c0_145 = arith.constant 0 : index
      %c0_146 = arith.constant 0 : index
      %433 = vector.load %arg15[%c0_145, %c0_146] : memref<8x16xf32, #tpu.memory_space<vmem>>, vector<8x16xf32>
      %c0_147 = arith.constant 0 : index
      %c0_148 = arith.constant 0 : index
      %434 = vector.load %arg23[%c0_147, %c0_148] : memref<8x16xf32, #tpu.memory_space<vmem>>, vector<8x16xf32>
      tpu.vector_store %arg23[%c0_147, %c0_148], %433 {strides = array<i32>} : memref<8x16xf32, #tpu.memory_space<vmem>>, vector<8x16xf32>,
      %c0_149 = arith.constant 0 : index
      %c0_150 = arith.constant 0 : index
      %435 = vector.load %arg17[%c0_149, %c0_150] : memref<8x16xf32, #tpu.memory_space<vmem>>, vector<8x16xf32>
      %c0_151 = arith.constant 0 : index
      %c0_152 = arith.constant 0 : index
      %436 = vector.load %arg25[%c0_151, %c0_152] : memref<8x16xf32, #tpu.memory_space<vmem>>, vector<8x16xf32>
      tpu.vector_store %arg25[%c0_151, %c0_152], %435 {strides = array<i32>} : memref<8x16xf32, #tpu.memory_space<vmem>>, vector<8x16xf32>,
    } else {
    }
    %c0 = arith.constant 0 : index
    %c0_1 = arith.constant 0 : index
    %3 = vector.load %arg7[%c0, %c0_1] : memref<1x1xf32, #tpu.memory_space<vmem>>, vector<1x1xf32>
    %c0_2 = arith.constant 0 : index
    %c0_3 = arith.constant 0 : index
    %4 = vector.load %arg1[%c0_2, %c0_3] : memref<32x8xf32, #tpu.memory_space<vmem>>, vector<32x8xf32>
    %c0_4 = arith.constant 0 : index
    %c0_5 = arith.constant 0 : index
    %5 = vector.load %arg5[%c0_4, %c0_5] : memref<8x16xf32, #tpu.memory_space<vmem>>, vector<8x16xf32>
    %cst = arith.constant dense<0.000000e+00> : vector<32x16xf32>
    %6 = tpu.matmul %4, %5, %cst {dimension_numbers = #tpu.dot_dimension_numbers<[1], [0], [0], [1], [0, 0, 1, 1], [], []>} : vector<32x8xf32>, vector<8x16xf32>, vector<32x16xf32> -> vector<32x16xf32>
    %c0_6 = arith.constant 0 : index
    %c0_7 = arith.constant 0 : index
    %7 = vector.load %arg6[%c0_6, %c0_7] : memref<1x16xf32, #tpu.memory_space<vmem>>, vector<1x16xf32>
    %8 = vector.broadcast %7 : vector<1x16xf32> to vector<32x16xf32>
    %9 = arith.addf %6, %8 : vector<32x16xf32>
    %cst_8 = arith.constant 0.000000e+00 : f32
    %10 = vector.broadcast %cst_8 : f32 to vector<32x16xf32>
    %11 = arith.cmpf oge, %9, %10 : vector<32x16xf32>
    %12 = vector.broadcast %3 : vector<1x1xf32> to vector<32x16xf32>
    %13 = arith.mulf %12, %9 : vector<32x16xf32>
    %14 = arith.select %11, %9, %13 : vector<32x16xi1>, vector<32x16xf32>
    %c0_9 = arith.constant 0 : index
    %c0_10 = arith.constant 0 : index
    %15 = vector.load %arg8[%c0_9, %c0_10] : memref<16x64xf32, #tpu.memory_space<vmem>>, vector<16x64xf32>
    %cst_11 = arith.constant dense<0.000000e+00> : vector<32x64xf32>
    %16 = tpu.matmul %14, %15, %cst_11 {dimension_numbers = #tpu.dot_dimension_numbers<[1], [0], [0], [1], [0, 0, 1, 1], [], []>} : vector<32x16xf32>, vector<16x64xf32>, vector<32x64xf32> -> vector<32x64xf32>
    %c0_12 = arith.constant 0 : index
    %c0_13 = arith.constant 0 : index
    %17 = vector.load %arg10[%c0_12, %c0_13] : memref<1x64xf32, #tpu.memory_space<vmem>>, vector<1x64xf32>
    %18 = vector.broadcast %17 : vector<1x64xf32> to vector<32x64xf32>
    %19 = arith.addf %16, %18 : vector<32x64xf32>
    %c0_14 = arith.constant 0 : index
    %c0_15 = arith.constant 0 : index
    %20 = vector.load %arg20[%c0_14, %c0_15] : memref<32x64xf32, #tpu.memory_space<vmem>>, vector<32x64xf32>
    tpu.vector_store %arg20[%c0_14, %c0_15], %19 {strides = array<i32>} : memref<32x64xf32, #tpu.memory_space<vmem>>, vector<32x64xf32>,
    %c0_16 = arith.constant 0 : index
    %c0_17 = arith.constant 0 : index
    %21 = vector.load %arg7[%c0_16, %c0_17] : memref<1x1xf32, #tpu.memory_space<vmem>>, vector<1x1xf32>
    %c0_18 = arith.constant 0 : index
    %c0_19 = arith.constant 0 : index
    %22 = vector.load %arg2[%c0_18, %c0_19] : memref<32x8xf32, #tpu.memory_space<vmem>>, vector<32x8xf32>
    %c0_20 = arith.constant 0 : index
    %c0_21 = arith.constant 0 : index
    %23 = vector.load %arg5[%c0_20, %c0_21] : memref<8x16xf32, #tpu.memory_space<vmem>>, vector<8x16xf32>
    %cst_22 = arith.constant dense<0.000000e+00> : vector<32x16xf32>
    %24 = tpu.matmul %22, %23, %cst_22 {dimension_numbers = #tpu.dot_dimension_numbers<[1], [0], [0], [1], [0, 0, 1, 1], [], []>} : vector<32x8xf32>, vector<8x16xf32>, vector<32x16xf32> -> vector<32x16xf32>
    %c0_23 = arith.constant 0 : index
    %c0_24 = arith.constant 0 : index
    %25 = vector.load %arg6[%c0_23, %c0_24] : memref<1x16xf32, #tpu.memory_space<vmem>>, vector<1x16xf32>
    %26 = vector.broadcast %25 : vector<1x16xf32> to vector<32x16xf32>
    %27 = arith.addf %24, %26 : vector<32x16xf32>
    %cst_25 = arith.constant 0.000000e+00 : f32
    %28 = vector.broadcast %cst_25 : f32 to vector<32x16xf32>
    %29 = arith.cmpf oge, %27, %28 : vector<32x16xf32>
    %30 = vector.broadcast %21 : vector<1x1xf32> to vector<32x16xf32>
    %31 = arith.mulf %30, %27 : vector<32x16xf32>
    %32 = arith.select %29, %27, %31 : vector<32x16xi1>, vector<32x16xf32>
    %c0_26 = arith.constant 0 : index
    %c0_27 = arith.constant 0 : index
    %33 = vector.load %arg9[%c0_26, %c0_27] : memref<16x64xf32, #tpu.memory_space<vmem>>, vector<16x64xf32>
    %cst_28 = arith.constant dense<0.000000e+00> : vector<32x64xf32>
    %34 = tpu.matmul %32, %33, %cst_28 {dimension_numbers = #tpu.dot_dimension_numbers<[1], [0], [0], [1], [0, 0, 1, 1], [], []>} : vector<32x16xf32>, vector<16x64xf32>, vector<32x64xf32> -> vector<32x64xf32>
    %c0_29 = arith.constant 0 : index
    %c0_30 = arith.constant 0 : index
    %35 = vector.load %arg11[%c0_29, %c0_30] : memref<1x64xf32, #tpu.memory_space<vmem>>, vector<1x64xf32>
    %36 = vector.broadcast %35 : vector<1x64xf32> to vector<32x64xf32>
    %37 = arith.addf %34, %36 : vector<32x64xf32>
    %c0_31 = arith.constant 0 : index
    %c0_32 = arith.constant 0 : index
    %38 = vector.load %arg21[%c0_31, %c0_32] : memref<32x64xf32, #tpu.memory_space<vmem>>, vector<32x64xf32>
    tpu.vector_store %arg21[%c0_31, %c0_32], %37 {strides = array<i32>} : memref<32x64xf32, #tpu.memory_space<vmem>>, vector<32x64xf32>,
    %c0_33 = arith.constant 0 : index
    %c0_34 = arith.constant 0 : index
    %39 = vector.load %arg12[%c0_33, %c0_34] : memref<16x64xf32, #tpu.memory_space<vmem>>, vector<16x64xf32>
    %c0_35 = arith.constant 0 : index
    %c0_36 = arith.constant 0 : index
    %40 = vector.load %arg13[%c0_35, %c0_36] : memref<16x64xf32, #tpu.memory_space<vmem>>, vector<16x64xf32>
    %c0_37 = arith.constant 0 : index
    %c0_38 = arith.constant 0 : index
    %41 = vector.load %arg22[%c0_37, %c0_38] : memref<8x16xf32, #tpu.memory_space<vmem>>, vector<8x16xf32>
    %c0_39 = arith.constant 0 : index
    %c0_40 = arith.constant 0 : index
    %42 = vector.load %arg23[%c0_39, %c0_40] : memref<8x16xf32, #tpu.memory_space<vmem>>, vector<8x16xf32>
    %c0_41 = arith.constant 0 : index
    %c0_42 = arith.constant 0 : index
    %43 = vector.load %arg24[%c0_41, %c0_42] : memref<8x16xf32, #tpu.memory_space<vmem>>, vector<8x16xf32>
    %c0_43 = arith.constant 0 : index
    %c0_44 = arith.constant 0 : index
    %44 = vector.load %arg25[%c0_43, %c0_44] : memref<8x16xf32, #tpu.memory_space<vmem>>, vector<8x16xf32>
    %c0_i32_45 = arith.constant 0 : i32
    %c8_i32 = arith.constant 8 : i32
    %45 = arith.muli %c0_i32_45, %c8_i32 : i32
    %46 = tpu.assume_multiple %45, 8 : i32
    %47 = arith.index_cast %46 : i32 to index
    %c0_46 = arith.constant 0 : index
    %48 = vector.load %arg20[%47, %c0_46] : memref<32x64xf32, #tpu.memory_space<vmem>>, vector<8x64xf32>
    %cst_47 = arith.constant dense<0.000000e+00> : vector<8x64xf32>
    %49 = tpu.matmul %41, %39, %cst_47 {dimension_numbers = #tpu.dot_dimension_numbers<[1], [0], [0], [1], [0, 0, 1, 1], [], []>} : vector<8x16xf32>, vector<16x64xf32>, vector<8x64xf32> -> vector<8x64xf32>
    %50 = arith.addf %48, %49 : vector<8x64xf32>
    %51 = vector.extract_strided_slice %50 {offsets = [0, 0], sizes = [8, 16], strides = [1, 1]} : vector<8x64xf32> to vector<8x16xf32>
    %52 = arith.negf %51 : vector<8x16xf32>
    %53 = math.exp %52 : vector<8x16xf32>
    %cst_48 = arith.constant 1.000000e+00 : f32
    %54 = vector.broadcast %cst_48 : f32 to vector<8x16xf32>
    %55 = arith.addf %54, %53 : vector<8x16xf32>
    %56 = arith.divf %54, %55 : vector<8x16xf32>
    %57 = vector.extract_strided_slice %50 {offsets = [0, 16], sizes = [8, 16], strides = [1, 1]} : vector<8x64xf32> to vector<8x16xf32>
    %58 = arith.negf %57 : vector<8x16xf32>
    %59 = math.exp %58 : vector<8x16xf32>
    %cst_49 = arith.constant 1.000000e+00 : f32
    %60 = vector.broadcast %cst_49 : f32 to vector<8x16xf32>
    %61 = arith.addf %60, %59 : vector<8x16xf32>
    %62 = arith.divf %60, %61 : vector<8x16xf32>
    %63 = vector.extract_strided_slice %50 {offsets = [0, 32], sizes = [8, 16], strides = [1, 1]} : vector<8x64xf32> to vector<8x16xf32>
    %64 = math.tanh %63 : vector<8x16xf32>
    %65 = vector.extract_strided_slice %50 {offsets = [0, 48], sizes = [8, 16], strides = [1, 1]} : vector<8x64xf32> to vector<8x16xf32>
    %66 = arith.negf %65 : vector<8x16xf32>
    %67 = math.exp %66 : vector<8x16xf32>
    %cst_50 = arith.constant 1.000000e+00 : f32
    %68 = vector.broadcast %cst_50 : f32 to vector<8x16xf32>
    %69 = arith.addf %68, %67 : vector<8x16xf32>
    %70 = arith.divf %68, %69 : vector<8x16xf32>
    %71 = arith.mulf %62, %43 : vector<8x16xf32>
    %72 = arith.mulf %56, %64 : vector<8x16xf32>
    %73 = arith.addf %71, %72 : vector<8x16xf32>
    %74 = math.tanh %73 : vector<8x16xf32>
    %75 = arith.mulf %70, %74 : vector<8x16xf32>
    %76 = arith.index_cast %46 : i32 to index
    %c0_51 = arith.constant 0 : index
    %77 = vector.load %arg3[%76, %c0_51] : memref<32x1xf32, #tpu.memory_space<vmem>>, vector<8x1xf32>
    %cst_52 = arith.constant 5.000000e-01 : f32
    %78 = vector.broadcast %cst_52 : f32 to vector<8x1xf32>
    %79 = arith.cmpf ogt, %77, %78 : vector<8x1xf32>
    %cst_53 = arith.constant 0.000000e+00 : f32
    %80 = vector.shape_cast %79 : vector<8x1xi1> to vector<8x1xi1>
    %81 = vector.broadcast %80 : vector<8x1xi1> to vector<8x16xi1>
    %82 = vector.broadcast %cst_53 : f32 to vector<8x16xf32>
    %83 = arith.select %81, %75, %82 : vector<8x16xi1>, vector<8x16xf32>
    %84 = arith.index_cast %46 : i32 to index
    %c0_54 = arith.constant 0 : index
    %85 = vector.load %arg18[%84, %c0_54] : memref<32x16xf32, #tpu.memory_space<vmem>>, vector<8x16xf32>
    tpu.vector_store %arg18[%84, %c0_54], %83 {strides = array<i32>} : memref<32x16xf32, #tpu.memory_space<vmem>>, vector<8x16xf32>,
    %86 = vector.shape_cast %79 : vector<8x1xi1> to vector<8x1xi1>
    %87 = vector.broadcast %86 : vector<8x1xi1> to vector<8x16xi1>
    %88 = arith.select %87, %75, %41 : vector<8x16xi1>, vector<8x16xf32>
    %89 = vector.shape_cast %79 : vector<8x1xi1> to vector<8x1xi1>
    %90 = vector.broadcast %89 : vector<8x1xi1> to vector<8x16xi1>
    %91 = arith.select %90, %73, %43 : vector<8x16xi1>, vector<8x16xf32>
    %c3_i32 = arith.constant 3 : i32
    %92 = arith.subi %c3_i32, %c0_i32_45 : i32
    %c8_i32_55 = arith.constant 8 : i32
    %93 = arith.muli %92, %c8_i32_55 : i32
    %94 = tpu.assume_multiple %93, 8 : i32
    %95 = arith.index_cast %94 : i32 to index
    %c0_56 = arith.constant 0 : index
    %96 = vector.load %arg21[%95, %c0_56] : memref<32x64xf32, #tpu.memory_space<vmem>>, vector<8x64xf32>
    %cst_57 = arith.constant dense<0.000000e+00> : vector<8x64xf32>
    %97 = tpu.matmul %42, %40, %cst_57 {dimension_numbers = #tpu.dot_dimension_numbers<[1], [0], [0], [1], [0, 0, 1, 1], [], []>} : vector<8x16xf32>, vector<16x64xf32>, vector<8x64xf32> -> vector<8x64xf32>
    %98 = arith.addf %96, %97 : vector<8x64xf32>
    %99 = vector.extract_strided_slice %98 {offsets = [0, 0], sizes = [8, 16], strides = [1, 1]} : vector<8x64xf32> to vector<8x16xf32>
    %100 = arith.negf %99 : vector<8x16xf32>
    %101 = math.exp %100 : vector<8x16xf32>
    %cst_58 = arith.constant 1.000000e+00 : f32
    %102 = vector.broadcast %cst_58 : f32 to vector<8x16xf32>
    %103 = arith.addf %102, %101 : vector<8x16xf32>
    %104 = arith.divf %102, %103 : vector<8x16xf32>
    %105 = vector.extract_strided_slice %98 {offsets = [0, 16], sizes = [8, 16], strides = [1, 1]} : vector<8x64xf32> to vector<8x16xf32>
    %106 = arith.negf %105 : vector<8x16xf32>
    %107 = math.exp %106 : vector<8x16xf32>
    %cst_59 = arith.constant 1.000000e+00 : f32
    %108 = vector.broadcast %cst_59 : f32 to vector<8x16xf32>
    %109 = arith.addf %108, %107 : vector<8x16xf32>
    %110 = arith.divf %108, %109 : vector<8x16xf32>
    %111 = vector.extract_strided_slice %98 {offsets = [0, 32], sizes = [8, 16], strides = [1, 1]} : vector<8x64xf32> to vector<8x16xf32>
    %112 = math.tanh %111 : vector<8x16xf32>
    %113 = vector.extract_strided_slice %98 {offsets = [0, 48], sizes = [8, 16], strides = [1, 1]} : vector<8x64xf32> to vector<8x16xf32>
    %114 = arith.negf %113 : vector<8x16xf32>
    %115 = math.exp %114 : vector<8x16xf32>
    %cst_60 = arith.constant 1.000000e+00 : f32
    %116 = vector.broadcast %cst_60 : f32 to vector<8x16xf32>
    %117 = arith.addf %116, %115 : vector<8x16xf32>
    %118 = arith.divf %116, %117 : vector<8x16xf32>
    %119 = arith.mulf %110, %44 : vector<8x16xf32>
    %120 = arith.mulf %104, %112 : vector<8x16xf32>
    %121 = arith.addf %119, %120 : vector<8x16xf32>
    %122 = math.tanh %121 : vector<8x16xf32>
    %123 = arith.mulf %118, %122 : vector<8x16xf32>
    %124 = arith.index_cast %94 : i32 to index
    %c0_61 = arith.constant 0 : index
    %125 = vector.load %arg4[%124, %c0_61] : memref<32x1xf32, #tpu.memory_space<vmem>>, vector<8x1xf32>
    %cst_62 = arith.constant 5.000000e-01 : f32
    %126 = vector.broadcast %cst_62 : f32 to vector<8x1xf32>
    %127 = arith.cmpf ogt, %125, %126 : vector<8x1xf32>
    %cst_63 = arith.constant 0.000000e+00 : f32
    %128 = vector.shape_cast %127 : vector<8x1xi1> to vector<8x1xi1>
    %129 = vector.broadcast %128 : vector<8x1xi1> to vector<8x16xi1>
    %130 = vector.broadcast %cst_63 : f32 to vector<8x16xf32>
    %131 = arith.select %129, %123, %130 : vector<8x16xi1>, vector<8x16xf32>
    %132 = arith.index_cast %94 : i32 to index
    %c0_64 = arith.constant 0 : index
    %133 = vector.load %arg19[%132, %c0_64] : memref<32x16xf32, #tpu.memory_space<vmem>>, vector<8x16xf32>
    tpu.vector_store %arg19[%132, %c0_64], %131 {strides = array<i32>} : memref<32x16xf32, #tpu.memory_space<vmem>>, vector<8x16xf32>,
    %134 = vector.shape_cast %127 : vector<8x1xi1> to vector<8x1xi1>
    %135 = vector.broadcast %134 : vector<8x1xi1> to vector<8x16xi1>
    %136 = arith.select %135, %123, %42 : vector<8x16xi1>, vector<8x16xf32>
    %137 = vector.shape_cast %127 : vector<8x1xi1> to vector<8x1xi1>
    %138 = vector.broadcast %137 : vector<8x1xi1> to vector<8x16xi1>
    %139 = arith.select %138, %121, %44 : vector<8x16xi1>, vector<8x16xf32>
    %c1_i32 = arith.constant 1 : i32
    %c8_i32_65 = arith.constant 8 : i32
    %140 = arith.muli %c1_i32, %c8_i32_65 : i32
    %141 = tpu.assume_multiple %140, 8 : i32
    %142 = arith.index_cast %141 : i32 to index
    %c0_66 = arith.constant 0 : index
    %143 = vector.load %arg20[%142, %c0_66] : memref<32x64xf32, #tpu.memory_space<vmem>>, vector<8x64xf32>
    %cst_67 = arith.constant dense<0.000000e+00> : vector<8x64xf32>
    %144 = tpu.matmul %88, %39, %cst_67 {dimension_numbers = #tpu.dot_dimension_numbers<[1], [0], [0], [1], [0, 0, 1, 1], [], []>} : vector<8x16xf32>, vector<16x64xf32>, vector<8x64xf32> -> vector<8x64xf32>
    %145 = arith.addf %143, %144 : vector<8x64xf32>
    %146 = vector.extract_strided_slice %145 {offsets = [0, 0], sizes = [8, 16], strides = [1, 1]} : vector<8x64xf32> to vector<8x16xf32>
    %147 = arith.negf %146 : vector<8x16xf32>
    %148 = math.exp %147 : vector<8x16xf32>
    %cst_68 = arith.constant 1.000000e+00 : f32
    %149 = vector.broadcast %cst_68 : f32 to vector<8x16xf32>
    %150 = arith.addf %149, %148 : vector<8x16xf32>
    %151 = arith.divf %149, %150 : vector<8x16xf32>
    %152 = vector.extract_strided_slice %145 {offsets = [0, 16], sizes = [8, 16], strides = [1, 1]} : vector<8x64xf32> to vector<8x16xf32>
    %153 = arith.negf %152 : vector<8x16xf32>
    %154 = math.exp %153 : vector<8x16xf32>
    %cst_69 = arith.constant 1.000000e+00 : f32
    %155 = vector.broadcast %cst_69 : f32 to vector<8x16xf32>
    %156 = arith.addf %155, %154 : vector<8x16xf32>
    %157 = arith.divf %155, %156 : vector<8x16xf32>
    %158 = vector.extract_strided_slice %145 {offsets = [0, 32], sizes = [8, 16], strides = [1, 1]} : vector<8x64xf32> to vector<8x16xf32>
    %159 = math.tanh %158 : vector<8x16xf32>
    %160 = vector.extract_strided_slice %145 {offsets = [0, 48], sizes = [8, 16], strides = [1, 1]} : vector<8x64xf32> to vector<8x16xf32>
    %161 = arith.negf %160 : vector<8x16xf32>
    %162 = math.exp %161 : vector<8x16xf32>
    %cst_70 = arith.constant 1.000000e+00 : f32
    %163 = vector.broadcast %cst_70 : f32 to vector<8x16xf32>
    %164 = arith.addf %163, %162 : vector<8x16xf32>
    %165 = arith.divf %163, %164 : vector<8x16xf32>
    %166 = arith.mulf %157, %91 : vector<8x16xf32>
    %167 = arith.mulf %151, %159 : vector<8x16xf32>
    %168 = arith.addf %166, %167 : vector<8x16xf32>
    %169 = math.tanh %168 : vector<8x16xf32>
    %170 = arith.mulf %165, %169 : vector<8x16xf32>
    %171 = arith.index_cast %141 : i32 to index
    %c0_71 = arith.constant 0 : index
    %172 = vector.load %arg3[%171, %c0_71] : memref<32x1xf32, #tpu.memory_space<vmem>>, vector<8x1xf32>
    %cst_72 = arith.constant 5.000000e-01 : f32
    %173 = vector.broadcast %cst_72 : f32 to vector<8x1xf32>
    %174 = arith.cmpf ogt, %172, %173 : vector<8x1xf32>
    %cst_73 = arith.constant 0.000000e+00 : f32
    %175 = vector.shape_cast %174 : vector<8x1xi1> to vector<8x1xi1>
    %176 = vector.broadcast %175 : vector<8x1xi1> to vector<8x16xi1>
    %177 = vector.broadcast %cst_73 : f32 to vector<8x16xf32>
    %178 = arith.select %176, %170, %177 : vector<8x16xi1>, vector<8x16xf32>
    %179 = arith.index_cast %141 : i32 to index
    %c0_74 = arith.constant 0 : index
    %180 = vector.load %arg18[%179, %c0_74] : memref<32x16xf32, #tpu.memory_space<vmem>>, vector<8x16xf32>
    tpu.vector_store %arg18[%179, %c0_74], %178 {strides = array<i32>} : memref<32x16xf32, #tpu.memory_space<vmem>>, vector<8x16xf32>,
    %181 = vector.shape_cast %174 : vector<8x1xi1> to vector<8x1xi1>
    %182 = vector.broadcast %181 : vector<8x1xi1> to vector<8x16xi1>
    %183 = arith.select %182, %170, %88 : vector<8x16xi1>, vector<8x16xf32>
    %184 = vector.shape_cast %174 : vector<8x1xi1> to vector<8x1xi1>
    %185 = vector.broadcast %184 : vector<8x1xi1> to vector<8x16xi1>
    %186 = arith.select %185, %168, %91 : vector<8x16xi1>, vector<8x16xf32>
    %c3_i32_75 = arith.constant 3 : i32
    %187 = arith.subi %c3_i32_75, %c1_i32 : i32
    %c8_i32_76 = arith.constant 8 : i32
    %188 = arith.muli %187, %c8_i32_76 : i32
    %189 = tpu.assume_multiple %188, 8 : i32
    %190 = arith.index_cast %189 : i32 to index
    %c0_77 = arith.constant 0 : index
    %191 = vector.load %arg21[%190, %c0_77] : memref<32x64xf32, #tpu.memory_space<vmem>>, vector<8x64xf32>
    %cst_78 = arith.constant dense<0.000000e+00> : vector<8x64xf32>
    %192 = tpu.matmul %136, %40, %cst_78 {dimension_numbers = #tpu.dot_dimension_numbers<[1], [0], [0], [1], [0, 0, 1, 1], [], []>} : vector<8x16xf32>, vector<16x64xf32>, vector<8x64xf32> -> vector<8x64xf32>
    %193 = arith.addf %191, %192 : vector<8x64xf32>
    %194 = vector.extract_strided_slice %193 {offsets = [0, 0], sizes = [8, 16], strides = [1, 1]} : vector<8x64xf32> to vector<8x16xf32>
    %195 = arith.negf %194 : vector<8x16xf32>
    %196 = math.exp %195 : vector<8x16xf32>
    %cst_79 = arith.constant 1.000000e+00 : f32
    %197 = vector.broadcast %cst_79 : f32 to vector<8x16xf32>
    %198 = arith.addf %197, %196 : vector<8x16xf32>
    %199 = arith.divf %197, %198 : vector<8x16xf32>
    %200 = vector.extract_strided_slice %193 {offsets = [0, 16], sizes = [8, 16], strides = [1, 1]} : vector<8x64xf32> to vector<8x16xf32>
    %201 = arith.negf %200 : vector<8x16xf32>
    %202 = math.exp %201 : vector<8x16xf32>
    %cst_80 = arith.constant 1.000000e+00 : f32
    %203 = vector.broadcast %cst_80 : f32 to vector<8x16xf32>
    %204 = arith.addf %203, %202 : vector<8x16xf32>
    %205 = arith.divf %203, %204 : vector<8x16xf32>
    %206 = vector.extract_strided_slice %193 {offsets = [0, 32], sizes = [8, 16], strides = [1, 1]} : vector<8x64xf32> to vector<8x16xf32>
    %207 = math.tanh %206 : vector<8x16xf32>
    %208 = vector.extract_strided_slice %193 {offsets = [0, 48], sizes = [8, 16], strides = [1, 1]} : vector<8x64xf32> to vector<8x16xf32>
    %209 = arith.negf %208 : vector<8x16xf32>
    %210 = math.exp %209 : vector<8x16xf32>
    %cst_81 = arith.constant 1.000000e+00 : f32
    %211 = vector.broadcast %cst_81 : f32 to vector<8x16xf32>
    %212 = arith.addf %211, %210 : vector<8x16xf32>
    %213 = arith.divf %211, %212 : vector<8x16xf32>
    %214 = arith.mulf %205, %139 : vector<8x16xf32>
    %215 = arith.mulf %199, %207 : vector<8x16xf32>
    %216 = arith.addf %214, %215 : vector<8x16xf32>
    %217 = math.tanh %216 : vector<8x16xf32>
    %218 = arith.mulf %213, %217 : vector<8x16xf32>
    %219 = arith.index_cast %189 : i32 to index
    %c0_82 = arith.constant 0 : index
    %220 = vector.load %arg4[%219, %c0_82] : memref<32x1xf32, #tpu.memory_space<vmem>>, vector<8x1xf32>
    %cst_83 = arith.constant 5.000000e-01 : f32
    %221 = vector.broadcast %cst_83 : f32 to vector<8x1xf32>
    %222 = arith.cmpf ogt, %220, %221 : vector<8x1xf32>
    %cst_84 = arith.constant 0.000000e+00 : f32
    %223 = vector.shape_cast %222 : vector<8x1xi1> to vector<8x1xi1>
    %224 = vector.broadcast %223 : vector<8x1xi1> to vector<8x16xi1>
    %225 = vector.broadcast %cst_84 : f32 to vector<8x16xf32>
    %226 = arith.select %224, %218, %225 : vector<8x16xi1>, vector<8x16xf32>
    %227 = arith.index_cast %189 : i32 to index
    %c0_85 = arith.constant 0 : index
    %228 = vector.load %arg19[%227, %c0_85] : memref<32x16xf32, #tpu.memory_space<vmem>>, vector<8x16xf32>
    tpu.vector_store %arg19[%227, %c0_85], %226 {strides = array<i32>} : memref<32x16xf32, #tpu.memory_space<vmem>>, vector<8x16xf32>,
    %229 = vector.shape_cast %222 : vector<8x1xi1> to vector<8x1xi1>
    %230 = vector.broadcast %229 : vector<8x1xi1> to vector<8x16xi1>
    %231 = arith.select %230, %218, %136 : vector<8x16xi1>, vector<8x16xf32>
    %232 = vector.shape_cast %222 : vector<8x1xi1> to vector<8x1xi1>
    %233 = vector.broadcast %232 : vector<8x1xi1> to vector<8x16xi1>
    %234 = arith.select %233, %216, %139 : vector<8x16xi1>, vector<8x16xf32>
    %c2_i32 = arith.constant 2 : i32
    %c8_i32_86 = arith.constant 8 : i32
    %235 = arith.muli %c2_i32, %c8_i32_86 : i32
    %236 = tpu.assume_multiple %235, 8 : i32
    %237 = arith.index_cast %236 : i32 to index
    %c0_87 = arith.constant 0 : index
    %238 = vector.load %arg20[%237, %c0_87] : memref<32x64xf32, #tpu.memory_space<vmem>>, vector<8x64xf32>
    %cst_88 = arith.constant dense<0.000000e+00> : vector<8x64xf32>
    %239 = tpu.matmul %183, %39, %cst_88 {dimension_numbers = #tpu.dot_dimension_numbers<[1], [0], [0], [1], [0, 0, 1, 1], [], []>} : vector<8x16xf32>, vector<16x64xf32>, vector<8x64xf32> -> vector<8x64xf32>
    %240 = arith.addf %238, %239 : vector<8x64xf32>
    %241 = vector.extract_strided_slice %240 {offsets = [0, 0], sizes = [8, 16], strides = [1, 1]} : vector<8x64xf32> to vector<8x16xf32>
    %242 = arith.negf %241 : vector<8x16xf32>
    %243 = math.exp %242 : vector<8x16xf32>
    %cst_89 = arith.constant 1.000000e+00 : f32
    %244 = vector.broadcast %cst_89 : f32 to vector<8x16xf32>
    %245 = arith.addf %244, %243 : vector<8x16xf32>
    %246 = arith.divf %244, %245 : vector<8x16xf32>
    %247 = vector.extract_strided_slice %240 {offsets = [0, 16], sizes = [8, 16], strides = [1, 1]} : vector<8x64xf32> to vector<8x16xf32>
    %248 = arith.negf %247 : vector<8x16xf32>
    %249 = math.exp %248 : vector<8x16xf32>
    %cst_90 = arith.constant 1.000000e+00 : f32
    %250 = vector.broadcast %cst_90 : f32 to vector<8x16xf32>
    %251 = arith.addf %250, %249 : vector<8x16xf32>
    %252 = arith.divf %250, %251 : vector<8x16xf32>
    %253 = vector.extract_strided_slice %240 {offsets = [0, 32], sizes = [8, 16], strides = [1, 1]} : vector<8x64xf32> to vector<8x16xf32>
    %254 = math.tanh %253 : vector<8x16xf32>
    %255 = vector.extract_strided_slice %240 {offsets = [0, 48], sizes = [8, 16], strides = [1, 1]} : vector<8x64xf32> to vector<8x16xf32>
    %256 = arith.negf %255 : vector<8x16xf32>
    %257 = math.exp %256 : vector<8x16xf32>
    %cst_91 = arith.constant 1.000000e+00 : f32
    %258 = vector.broadcast %cst_91 : f32 to vector<8x16xf32>
    %259 = arith.addf %258, %257 : vector<8x16xf32>
    %260 = arith.divf %258, %259 : vector<8x16xf32>
    %261 = arith.mulf %252, %186 : vector<8x16xf32>
    %262 = arith.mulf %246, %254 : vector<8x16xf32>
    %263 = arith.addf %261, %262 : vector<8x16xf32>
    %264 = math.tanh %263 : vector<8x16xf32>
    %265 = arith.mulf %260, %264 : vector<8x16xf32>
    %266 = arith.index_cast %236 : i32 to index
    %c0_92 = arith.constant 0 : index
    %267 = vector.load %arg3[%266, %c0_92] : memref<32x1xf32, #tpu.memory_space<vmem>>, vector<8x1xf32>
    %cst_93 = arith.constant 5.000000e-01 : f32
    %268 = vector.broadcast %cst_93 : f32 to vector<8x1xf32>
    %269 = arith.cmpf ogt, %267, %268 : vector<8x1xf32>
    %cst_94 = arith.constant 0.000000e+00 : f32
    %270 = vector.shape_cast %269 : vector<8x1xi1> to vector<8x1xi1>
    %271 = vector.broadcast %270 : vector<8x1xi1> to vector<8x16xi1>
    %272 = vector.broadcast %cst_94 : f32 to vector<8x16xf32>
    %273 = arith.select %271, %265, %272 : vector<8x16xi1>, vector<8x16xf32>
    %274 = arith.index_cast %236 : i32 to index
    %c0_95 = arith.constant 0 : index
    %275 = vector.load %arg18[%274, %c0_95] : memref<32x16xf32, #tpu.memory_space<vmem>>, vector<8x16xf32>
    tpu.vector_store %arg18[%274, %c0_95], %273 {strides = array<i32>} : memref<32x16xf32, #tpu.memory_space<vmem>>, vector<8x16xf32>,
    %276 = vector.shape_cast %269 : vector<8x1xi1> to vector<8x1xi1>
    %277 = vector.broadcast %276 : vector<8x1xi1> to vector<8x16xi1>
    %278 = arith.select %277, %265, %183 : vector<8x16xi1>, vector<8x16xf32>
    %279 = vector.shape_cast %269 : vector<8x1xi1> to vector<8x1xi1>
    %280 = vector.broadcast %279 : vector<8x1xi1> to vector<8x16xi1>
    %281 = arith.select %280, %263, %186 : vector<8x16xi1>, vector<8x16xf32>
    %c3_i32_96 = arith.constant 3 : i32
    %282 = arith.subi %c3_i32_96, %c2_i32 : i32
    %c8_i32_97 = arith.constant 8 : i32
    %283 = arith.muli %282, %c8_i32_97 : i32
    %284 = tpu.assume_multiple %283, 8 : i32
    %285 = arith.index_cast %284 : i32 to index
    %c0_98 = arith.constant 0 : index
    %286 = vector.load %arg21[%285, %c0_98] : memref<32x64xf32, #tpu.memory_space<vmem>>, vector<8x64xf32>
    %cst_99 = arith.constant dense<0.000000e+00> : vector<8x64xf32>
    %287 = tpu.matmul %231, %40, %cst_99 {dimension_numbers = #tpu.dot_dimension_numbers<[1], [0], [0], [1], [0, 0, 1, 1], [], []>} : vector<8x16xf32>, vector<16x64xf32>, vector<8x64xf32> -> vector<8x64xf32>
    %288 = arith.addf %286, %287 : vector<8x64xf32>
    %289 = vector.extract_strided_slice %288 {offsets = [0, 0], sizes = [8, 16], strides = [1, 1]} : vector<8x64xf32> to vector<8x16xf32>
    %290 = arith.negf %289 : vector<8x16xf32>
    %291 = math.exp %290 : vector<8x16xf32>
    %cst_100 = arith.constant 1.000000e+00 : f32
    %292 = vector.broadcast %cst_100 : f32 to vector<8x16xf32>
    %293 = arith.addf %292, %291 : vector<8x16xf32>
    %294 = arith.divf %292, %293 : vector<8x16xf32>
    %295 = vector.extract_strided_slice %288 {offsets = [0, 16], sizes = [8, 16], strides = [1, 1]} : vector<8x64xf32> to vector<8x16xf32>
    %296 = arith.negf %295 : vector<8x16xf32>
    %297 = math.exp %296 : vector<8x16xf32>
    %cst_101 = arith.constant 1.000000e+00 : f32
    %298 = vector.broadcast %cst_101 : f32 to vector<8x16xf32>
    %299 = arith.addf %298, %297 : vector<8x16xf32>
    %300 = arith.divf %298, %299 : vector<8x16xf32>
    %301 = vector.extract_strided_slice %288 {offsets = [0, 32], sizes = [8, 16], strides = [1, 1]} : vector<8x64xf32> to vector<8x16xf32>
    %302 = math.tanh %301 : vector<8x16xf32>
    %303 = vector.extract_strided_slice %288 {offsets = [0, 48], sizes = [8, 16], strides = [1, 1]} : vector<8x64xf32> to vector<8x16xf32>
    %304 = arith.negf %303 : vector<8x16xf32>
    %305 = math.exp %304 : vector<8x16xf32>
    %cst_102 = arith.constant 1.000000e+00 : f32
    %306 = vector.broadcast %cst_102 : f32 to vector<8x16xf32>
    %307 = arith.addf %306, %305 : vector<8x16xf32>
    %308 = arith.divf %306, %307 : vector<8x16xf32>
    %309 = arith.mulf %300, %234 : vector<8x16xf32>
    %310 = arith.mulf %294, %302 : vector<8x16xf32>
    %311 = arith.addf %309, %310 : vector<8x16xf32>
    %312 = math.tanh %311 : vector<8x16xf32>
    %313 = arith.mulf %308, %312 : vector<8x16xf32>
    %314 = arith.index_cast %284 : i32 to index
    %c0_103 = arith.constant 0 : index
    %315 = vector.load %arg4[%314, %c0_103] : memref<32x1xf32, #tpu.memory_space<vmem>>, vector<8x1xf32>
    %cst_104 = arith.constant 5.000000e-01 : f32
    %316 = vector.broadcast %cst_104 : f32 to vector<8x1xf32>
    %317 = arith.cmpf ogt, %315, %316 : vector<8x1xf32>
    %cst_105 = arith.constant 0.000000e+00 : f32
    %318 = vector.shape_cast %317 : vector<8x1xi1> to vector<8x1xi1>
    %319 = vector.broadcast %318 : vector<8x1xi1> to vector<8x16xi1>
    %320 = vector.broadcast %cst_105 : f32 to vector<8x16xf32>
    %321 = arith.select %319, %313, %320 : vector<8x16xi1>, vector<8x16xf32>
    %322 = arith.index_cast %284 : i32 to index
    %c0_106 = arith.constant 0 : index
    %323 = vector.load %arg19[%322, %c0_106] : memref<32x16xf32, #tpu.memory_space<vmem>>, vector<8x16xf32>
    tpu.vector_store %arg19[%322, %c0_106], %321 {strides = array<i32>} : memref<32x16xf32, #tpu.memory_space<vmem>>, vector<8x16xf32>,
    %324 = vector.shape_cast %317 : vector<8x1xi1> to vector<8x1xi1>
    %325 = vector.broadcast %324 : vector<8x1xi1> to vector<8x16xi1>
    %326 = arith.select %325, %313, %231 : vector<8x16xi1>, vector<8x16xf32>
    %327 = vector.shape_cast %317 : vector<8x1xi1> to vector<8x1xi1>
    %328 = vector.broadcast %327 : vector<8x1xi1> to vector<8x16xi1>
    %329 = arith.select %328, %311, %234 : vector<8x16xi1>, vector<8x16xf32>
    %c3_i32_107 = arith.constant 3 : i32
    %c8_i32_108 = arith.constant 8 : i32
    %330 = arith.muli %c3_i32_107, %c8_i32_108 : i32
    %331 = tpu.assume_multiple %330, 8 : i32
    %332 = arith.index_cast %331 : i32 to index
    %c0_109 = arith.constant 0 : index
    %333 = vector.load %arg20[%332, %c0_109] : memref<32x64xf32, #tpu.memory_space<vmem>>, vector<8x64xf32>
    %cst_110 = arith.constant dense<0.000000e+00> : vector<8x64xf32>
    %334 = tpu.matmul %278, %39, %cst_110 {dimension_numbers = #tpu.dot_dimension_numbers<[1], [0], [0], [1], [0, 0, 1, 1], [], []>} : vector<8x16xf32>, vector<16x64xf32>, vector<8x64xf32> -> vector<8x64xf32>
    %335 = arith.addf %333, %334 : vector<8x64xf32>
    %336 = vector.extract_strided_slice %335 {offsets = [0, 0], sizes = [8, 16], strides = [1, 1]} : vector<8x64xf32> to vector<8x16xf32>
    %337 = arith.negf %336 : vector<8x16xf32>
    %338 = math.exp %337 : vector<8x16xf32>
    %cst_111 = arith.constant 1.000000e+00 : f32
    %339 = vector.broadcast %cst_111 : f32 to vector<8x16xf32>
    %340 = arith.addf %339, %338 : vector<8x16xf32>
    %341 = arith.divf %339, %340 : vector<8x16xf32>
    %342 = vector.extract_strided_slice %335 {offsets = [0, 16], sizes = [8, 16], strides = [1, 1]} : vector<8x64xf32> to vector<8x16xf32>
    %343 = arith.negf %342 : vector<8x16xf32>
    %344 = math.exp %343 : vector<8x16xf32>
    %cst_112 = arith.constant 1.000000e+00 : f32
    %345 = vector.broadcast %cst_112 : f32 to vector<8x16xf32>
    %346 = arith.addf %345, %344 : vector<8x16xf32>
    %347 = arith.divf %345, %346 : vector<8x16xf32>
    %348 = vector.extract_strided_slice %335 {offsets = [0, 32], sizes = [8, 16], strides = [1, 1]} : vector<8x64xf32> to vector<8x16xf32>
    %349 = math.tanh %348 : vector<8x16xf32>
    %350 = vector.extract_strided_slice %335 {offsets = [0, 48], sizes = [8, 16], strides = [1, 1]} : vector<8x64xf32> to vector<8x16xf32>
    %351 = arith.negf %350 : vector<8x16xf32>
    %352 = math.exp %351 : vector<8x16xf32>
    %cst_113 = arith.constant 1.000000e+00 : f32
    %353 = vector.broadcast %cst_113 : f32 to vector<8x16xf32>
    %354 = arith.addf %353, %352 : vector<8x16xf32>
    %355 = arith.divf %353, %354 : vector<8x16xf32>
    %356 = arith.mulf %347, %281 : vector<8x16xf32>
    %357 = arith.mulf %341, %349 : vector<8x16xf32>
    %358 = arith.addf %356, %357 : vector<8x16xf32>
    %359 = math.tanh %358 : vector<8x16xf32>
    %360 = arith.mulf %355, %359 : vector<8x16xf32>
    %361 = arith.index_cast %331 : i32 to index
    %c0_114 = arith.constant 0 : index
    %362 = vector.load %arg3[%361, %c0_114] : memref<32x1xf32, #tpu.memory_space<vmem>>, vector<8x1xf32>
    %cst_115 = arith.constant 5.000000e-01 : f32
    %363 = vector.broadcast %cst_115 : f32 to vector<8x1xf32>
    %364 = arith.cmpf ogt, %362, %363 : vector<8x1xf32>
    %cst_116 = arith.constant 0.000000e+00 : f32
    %365 = vector.shape_cast %364 : vector<8x1xi1> to vector<8x1xi1>
    %366 = vector.broadcast %365 : vector<8x1xi1> to vector<8x16xi1>
    %367 = vector.broadcast %cst_116 : f32 to vector<8x16xf32>
    %368 = arith.select %366, %360, %367 : vector<8x16xi1>, vector<8x16xf32>
    %369 = arith.index_cast %331 : i32 to index
    %c0_117 = arith.constant 0 : index
    %370 = vector.load %arg18[%369, %c0_117] : memref<32x16xf32, #tpu.memory_space<vmem>>, vector<8x16xf32>
    tpu.vector_store %arg18[%369, %c0_117], %368 {strides = array<i32>} : memref<32x16xf32, #tpu.memory_space<vmem>>, vector<8x16xf32>,
    %371 = vector.shape_cast %364 : vector<8x1xi1> to vector<8x1xi1>
    %372 = vector.broadcast %371 : vector<8x1xi1> to vector<8x16xi1>
    %373 = arith.select %372, %360, %278 : vector<8x16xi1>, vector<8x16xf32>
    %374 = vector.shape_cast %364 : vector<8x1xi1> to vector<8x1xi1>
    %375 = vector.broadcast %374 : vector<8x1xi1> to vector<8x16xi1>
    %376 = arith.select %375, %358, %281 : vector<8x16xi1>, vector<8x16xf32>
    %c3_i32_118 = arith.constant 3 : i32
    %377 = arith.subi %c3_i32_118, %c3_i32_107 : i32
    %c8_i32_119 = arith.constant 8 : i32
    %378 = arith.muli %377, %c8_i32_119 : i32
    %379 = tpu.assume_multiple %378, 8 : i32
    %380 = arith.index_cast %379 : i32 to index
    %c0_120 = arith.constant 0 : index
    %381 = vector.load %arg21[%380, %c0_120] : memref<32x64xf32, #tpu.memory_space<vmem>>, vector<8x64xf32>
    %cst_121 = arith.constant dense<0.000000e+00> : vector<8x64xf32>
    %382 = tpu.matmul %326, %40, %cst_121 {dimension_numbers = #tpu.dot_dimension_numbers<[1], [0], [0], [1], [0, 0, 1, 1], [], []>} : vector<8x16xf32>, vector<16x64xf32>, vector<8x64xf32> -> vector<8x64xf32>
    %383 = arith.addf %381, %382 : vector<8x64xf32>
    %384 = vector.extract_strided_slice %383 {offsets = [0, 0], sizes = [8, 16], strides = [1, 1]} : vector<8x64xf32> to vector<8x16xf32>
    %385 = arith.negf %384 : vector<8x16xf32>
    %386 = math.exp %385 : vector<8x16xf32>
    %cst_122 = arith.constant 1.000000e+00 : f32
    %387 = vector.broadcast %cst_122 : f32 to vector<8x16xf32>
    %388 = arith.addf %387, %386 : vector<8x16xf32>
    %389 = arith.divf %387, %388 : vector<8x16xf32>
    %390 = vector.extract_strided_slice %383 {offsets = [0, 16], sizes = [8, 16], strides = [1, 1]} : vector<8x64xf32> to vector<8x16xf32>
    %391 = arith.negf %390 : vector<8x16xf32>
    %392 = math.exp %391 : vector<8x16xf32>
    %cst_123 = arith.constant 1.000000e+00 : f32
    %393 = vector.broadcast %cst_123 : f32 to vector<8x16xf32>
    %394 = arith.addf %393, %392 : vector<8x16xf32>
    %395 = arith.divf %393, %394 : vector<8x16xf32>
    %396 = vector.extract_strided_slice %383 {offsets = [0, 32], sizes = [8, 16], strides = [1, 1]} : vector<8x64xf32> to vector<8x16xf32>
    %397 = math.tanh %396 : vector<8x16xf32>
    %398 = vector.extract_strided_slice %383 {offsets = [0, 48], sizes = [8, 16], strides = [1, 1]} : vector<8x64xf32> to vector<8x16xf32>
    %399 = arith.negf %398 : vector<8x16xf32>
    %400 = math.exp %399 : vector<8x16xf32>
    %cst_124 = arith.constant 1.000000e+00 : f32
    %401 = vector.broadcast %cst_124 : f32 to vector<8x16xf32>
    %402 = arith.addf %401, %400 : vector<8x16xf32>
    %403 = arith.divf %401, %402 : vector<8x16xf32>
    %404 = arith.mulf %395, %329 : vector<8x16xf32>
    %405 = arith.mulf %389, %397 : vector<8x16xf32>
    %406 = arith.addf %404, %405 : vector<8x16xf32>
    %407 = math.tanh %406 : vector<8x16xf32>
    %408 = arith.mulf %403, %407 : vector<8x16xf32>
    %409 = arith.index_cast %379 : i32 to index
    %c0_125 = arith.constant 0 : index
    %410 = vector.load %arg4[%409, %c0_125] : memref<32x1xf32, #tpu.memory_space<vmem>>, vector<8x1xf32>
    %cst_126 = arith.constant 5.000000e-01 : f32
    %411 = vector.broadcast %cst_126 : f32 to vector<8x1xf32>
    %412 = arith.cmpf ogt, %410, %411 : vector<8x1xf32>
    %cst_127 = arith.constant 0.000000e+00 : f32
    %413 = vector.shape_cast %412 : vector<8x1xi1> to vector<8x1xi1>
    %414 = vector.broadcast %413 : vector<8x1xi1> to vector<8x16xi1>
    %415 = vector.broadcast %cst_127 : f32 to vector<8x16xf32>
    %416 = arith.select %414, %408, %415 : vector<8x16xi1>, vector<8x16xf32>
    %417 = arith.index_cast %379 : i32 to index
    %c0_128 = arith.constant 0 : index
    %418 = vector.load %arg19[%417, %c0_128] : memref<32x16xf32, #tpu.memory_space<vmem>>, vector<8x16xf32>
    tpu.vector_store %arg19[%417, %c0_128], %416 {strides = array<i32>} : memref<32x16xf32, #tpu.memory_space<vmem>>, vector<8x16xf32>,
    %419 = vector.shape_cast %412 : vector<8x1xi1> to vector<8x1xi1>
    %420 = vector.broadcast %419 : vector<8x1xi1> to vector<8x16xi1>
    %421 = arith.select %420, %408, %326 : vector<8x16xi1>, vector<8x16xf32>
    %422 = vector.shape_cast %412 : vector<8x1xi1> to vector<8x1xi1>
    %423 = vector.broadcast %422 : vector<8x1xi1> to vector<8x16xi1>
    %424 = arith.select %423, %406, %329 : vector<8x16xi1>, vector<8x16xf32>
    %c4_i32 = arith.constant 4 : i32
    %c0_129 = arith.constant 0 : index
    %c0_130 = arith.constant 0 : index
    %425 = vector.load %arg22[%c0_129, %c0_130] : memref<8x16xf32, #tpu.memory_space<vmem>>, vector<8x16xf32>
    tpu.vector_store %arg22[%c0_129, %c0_130], %373 {strides = array<i32>} : memref<8x16xf32, #tpu.memory_space<vmem>>, vector<8x16xf32>,
    %c0_131 = arith.constant 0 : index
    %c0_132 = arith.constant 0 : index
    %426 = vector.load %arg24[%c0_131, %c0_132] : memref<8x16xf32, #tpu.memory_space<vmem>>, vector<8x16xf32>
    tpu.vector_store %arg24[%c0_131, %c0_132], %376 {strides = array<i32>} : memref<8x16xf32, #tpu.memory_space<vmem>>, vector<8x16xf32>,
    %c0_133 = arith.constant 0 : index
    %c0_134 = arith.constant 0 : index
    %427 = vector.load %arg23[%c0_133, %c0_134] : memref<8x16xf32, #tpu.memory_space<vmem>>, vector<8x16xf32>
    tpu.vector_store %arg23[%c0_133, %c0_134], %421 {strides = array<i32>} : memref<8x16xf32, #tpu.memory_space<vmem>>, vector<8x16xf32>,
    %c0_135 = arith.constant 0 : index
    %c0_136 = arith.constant 0 : index
    %428 = vector.load %arg25[%c0_135, %c0_136] : memref<8x16xf32, #tpu.memory_space<vmem>>, vector<8x16xf32>
    tpu.vector_store %arg25[%c0_135, %c0_136], %424 {strides = array<i32>} : memref<8x16xf32, #tpu.memory_space<vmem>>, vector<8x16xf32>,
    return
  }
  func.func @transform_0(%arg0: i32) -> (i32, i32) {
    %c0_i32 = arith.constant 0 : i32
    %c0_i32_0 = arith.constant 0 : i32
    return %arg0, %c0_i32 : i32, i32
  }
  func.func @transform_1(%arg0: i32) -> (i32, i32) {
    %c1_i32 = arith.constant 1 : i32
    %0 = arith.subi %c1_i32, %arg0 : i32
    %c0_i32 = arith.constant 0 : i32
    %c0_i32_0 = arith.constant 0 : i32
    return %0, %c0_i32 : i32, i32
  }
  func.func @transform_2(%arg0: i32) -> (i32, i32) {
    %c0_i32 = arith.constant 0 : i32
    %c0_i32_0 = arith.constant 0 : i32
    return %arg0, %c0_i32 : i32, i32
  }
  func.func @transform_3(%arg0: i32) -> (i32, i32) {
    %c1_i32 = arith.constant 1 : i32
    %0 = arith.subi %c1_i32, %arg0 : i32
    %c0_i32 = arith.constant 0 : i32
    %c0_i32_0 = arith.constant 0 : i32
    return %0, %c0_i32 : i32, i32
  }
  func.func @transform_4(%arg0: i32) -> (i32, i32) {
    %c0_i32 = arith.constant 0 : i32
    %c0_i32_0 = arith.constant 0 : i32
    %c0_i32_1 = arith.constant 0 : i32
    return %c0_i32, %c0_i32_0 : i32, i32
  }
  func.func @transform_5(%arg0: i32) -> (i32, i32) {
    %c0_i32 = arith.constant 0 : i32
    %c0_i32_0 = arith.constant 0 : i32
    %c0_i32_1 = arith.constant 0 : i32
    return %c0_i32, %c0_i32_0 : i32, i32
  }
  func.func @transform_6(%arg0: i32) -> (i32, i32) {
    %c0_i32 = arith.constant 0 : i32
    %c0_i32_0 = arith.constant 0 : i32
    %c0_i32_1 = arith.constant 0 : i32
    return %c0_i32, %c0_i32_0 : i32, i32
  }
  func.func @transform_7(%arg0: i32) -> (i32, i32) {
    %c0_i32 = arith.constant 0 : i32
    %c0_i32_0 = arith.constant 0 : i32
    %c0_i32_1 = arith.constant 0 : i32
    return %c0_i32, %c0_i32_0 : i32, i32
  }
  func.func @transform_8(%arg0: i32) -> (i32, i32) {
    %c0_i32 = arith.constant 0 : i32
    %c0_i32_0 = arith.constant 0 : i32
    %c0_i32_1 = arith.constant 0 : i32
    return %c0_i32, %c0_i32_0 : i32, i32
  }
  func.func @transform_9(%arg0: i32) -> (i32, i32) {
    %c0_i32 = arith.constant 0 : i32
    %c0_i32_0 = arith.constant 0 : i32
    %c0_i32_1 = arith.constant 0 : i32
    return %c0_i32, %c0_i32_0 : i32, i32
  }
  func.func @transform_10(%arg0: i32) -> (i32, i32) {
    %c0_i32 = arith.constant 0 : i32
    %c0_i32_0 = arith.constant 0 : i32
    %c0_i32_1 = arith.constant 0 : i32
    return %c0_i32, %c0_i32_0 : i32, i32
  }
  func.func @transform_11(%arg0: i32) -> (i32, i32) {
    %c0_i32 = arith.constant 0 : i32
    %c0_i32_0 = arith.constant 0 : i32
    %c0_i32_1 = arith.constant 0 : i32
    return %c0_i32, %c0_i32_0 : i32, i32
  }
  func.func @transform_12(%arg0: i32) -> (i32, i32) {
    %c0_i32 = arith.constant 0 : i32
    %c0_i32_0 = arith.constant 0 : i32
    %c0_i32_1 = arith.constant 0 : i32
    return %c0_i32, %c0_i32_0 : i32, i32
  }
  func.func @transform_13(%arg0: i32) -> (i32, i32) {
    %c0_i32 = arith.constant 0 : i32
    %c0_i32_0 = arith.constant 0 : i32
    %c0_i32_1 = arith.constant 0 : i32
    return %c0_i32, %c0_i32_0 : i32, i32
  }
  func.func @transform_14(%arg0: i32) -> (i32, i32) {
    %c0_i32 = arith.constant 0 : i32
    %c0_i32_0 = arith.constant 0 : i32
    %c0_i32_1 = arith.constant 0 : i32
    return %c0_i32, %c0_i32_0 : i32, i32
  }
  func.func @transform_15(%arg0: i32) -> (i32, i32) {
    %c0_i32 = arith.constant 0 : i32
    %c0_i32_0 = arith.constant 0 : i32
    %c0_i32_1 = arith.constant 0 : i32
    return %c0_i32, %c0_i32_0 : i32, i32
  }
  func.func @transform_16(%arg0: i32) -> (i32, i32) {
    %c0_i32 = arith.constant 0 : i32
    %c0_i32_0 = arith.constant 0 : i32
    %c0_i32_1 = arith.constant 0 : i32
    return %c0_i32, %c0_i32_0 : i32, i32
  }
  func.func @transform_17(%arg0: i32) -> (i32, i32) {
    %c0_i32 = arith.constant 0 : i32
    %c0_i32_0 = arith.constant 0 : i32
    return %arg0, %c0_i32 : i32, i32
  }
  func.func @transform_18(%arg0: i32) -> (i32, i32) {
    %c1_i32 = arith.constant 1 : i32
    %0 = arith.subi %c1_i32, %arg0 : i32
    %c0_i32 = arith.constant 0 : i32
    %c0_i32_0 = arith.constant 0 : i32
    return %0, %c0_i32 : i32, i32
  }
}

</mosaic_0001>

<bundles_post_ra>
// kernel: tpu_custom_call.1
= control target key start
LH: loop header
LB: loop body
LE: loop exit
PB: predicated region body
PF: predicated region fallthrough
CT: control target
= control target key end

     0   :  { %s2697_s29 = smov 0   ;;  %s3120_s0 = inlined_call_operand.vmem [shape: f32[64,8], index: 0, kind: input, shape index: {}]   ;;  %s3121_s1 = inlined_call_operand.vmem [shape: f32[64,8], index: 1, kind: input, shape index: {}]   ;;  %s3122_s2 = inlined_call_operand.vmem [shape: f32[64,1], index: 2, kind: input, shape index: {}]   ;;  %s3123_s3 = inlined_call_operand.vmem [shape: f32[64,1], index: 3, kind: input, shape index: {}]   ;;  %s3124_s4 = inlined_call_operand.vmem [shape: f32[8,16], index: 4, kind: input, shape index: {}]   ;;  %s3125_s5 = inlined_call_operand.vmem [shape: f32[1,16], index: 5, kind: input, shape index: {}]   ;;  %s3126_s6 = inlined_call_operand.<no memory space> [shape: f32[1,1], index: 6, kind: input, shape index: {}]   ;;  %s3127_s7 = inlined_call_operand.vmem [shape: f32[16,64], index: 7, kind: input, shape index: {}]   ;;  %s3128_s8 = inlined_call_operand.vmem [shape: f32[16,64], index: 8, kind: input, shape index: {}]   ;;  %s3129_s9 = inlined_call_operand.vmem [shape: f32[1,64], index: 9, kind: input, shape index: {}]   ;;  %s3130_s10 = inlined_call_operand.vmem [shape: f32[1,64], index: 10, kind: input, shape index: {}]   ;;  %s3131_s11 = inlined_call_operand.vmem [shape: f32[16,64], index: 11, kind: input, shape index: {}]   ;;  %s3132_s12 = inlined_call_operand.vmem [shape: f32[16,64], index: 12, kind: input, shape index: {}]   ;;  %s3133_s13 = inlined_call_operand.vmem [shape: f32[8,16], index: 13, kind: input, shape index: {}]   ;;  %s3134_s14 = inlined_call_operand.vmem [shape: f32[8,16], index: 14, kind: input, shape index: {}]   ;;  %s3135_s15 = inlined_call_operand.vmem [shape: f32[8,16], index: 15, kind: input, shape index: {}]   ;;  %s3136_s16 = inlined_call_operand.vmem [shape: f32[8,16], index: 16, kind: input, shape index: {}]   ;;  %s3137_s17 = inlined_call_operand.vmem [shape: f32[64,16], index: 17, kind: output, shape index: {0}]   ;;  %s3138_s18 = inlined_call_operand.vmem [shape: f32[64,16], index: 18, kind: output, shape index: {1}]  }
   0x1   :  { %3141 = sst [smem:[#allocation10_spill]] %s3120_s0  ;;  %v24_v0 = vstv %s3126_s6 }
   0x2   :  { %3142 = sst [smem:[#allocation11_spill]] %s3121_s1  ;;  %25 = vst [vmem:[#allocation8] sm:$0x1] %v24_v0 }
   0x3   :  { %3143 = sst [smem:[#allocation12_spill]] %s3122_s2 }
   0x4   :  { %3144 = sst [smem:[#allocation13_spill]] %s3125_s5 }
   0x5   :  { %3145 = sst [smem:[#allocation14_spill]] %s3129_s9 }
   0x6   :  { %3146 = sst [smem:[#allocation15_spill]] %s3130_s10 }
   0x7   :  { %3147 = sst [smem:[#allocation16_spill]] %s3132_s12 }
   0x8 LB: > { %3148 = sst [smem:[#allocation9_spill]] %s2588_s29  ;;  %s2291_s30 = sadd.s32 4294967295, %s2588_s29   ;;  %s2588_s29 = sphi %s2697_s29, %s31_s29  }
   0x9   : > { %p2295_p0 = scmp.ge.s32.totalorder %s2588_s29, 1  ;;  %p561_p1 = scmp.lt.s32.totalorder %s2588_s29, 3 }
   0xb   : > { %p562_p2 = pnand %p2295_p0, %p561_p1 }
   0xc   : > { %s2296_s0 = sshll.u32 (!%p562_p2), %s2291_s30, 2  ;;  %s644_s19 = ssub.s32 (!%p562_p2), 1, %s2291_s30 }
   0xd   : > { %565 = sbr.rel (%p562_p2) target bundleno = 3026 (0xbd2), region = 88  ;;  %p639_p3 = scmp.lt.s32.totalorder (!%p562_p2), %s2296_s0, 7 }
   0xe   : > { %s2298_s6 = sshll.u32 (!%p562_p2), %s644_s19, 2  ;;  %s3149_s22 = sld [smem:[#allocation10_spill]] (!%p562_p2) }
   0xf   : > { %p646_p4 = scmp.lt.s32.totalorder (!%p562_p2), %s2298_s6, 7  ;;  %s3150_s26 = sld [smem:[#allocation11_spill]] (!%p562_p2) }
  0x10   : > { %s3151_s10 = sld [smem:[#allocation12_spill]] (!%p562_p2)  ;;  %p2308_p5 = scmp.ne.s32.totalorder (!%p562_p2), %s2291_s30, 0 }
  0x12   : > { %s3158_s0 = smov (!%p639_p3, %s2296_s0), 7  ;;  %s3160_s6 = smov (!%p646_p4, %s2298_s6), 7 }
  0x13   : > { %s2297_s1 = sshll.u32 %s3158_s0, 3  ;;  %s2299_s23 = sshll.u32 %s3160_s6, 3 }
  0x14   : > { %s2708_s2 = scalar_lea.vmem %s3149_s22, %s2297_s1  ;;  %s2723_s0 = scalar_lea.vmem %s3123_s3, %s2299_s23 }
  0x15   : > { %s2713_s27 = scalar_lea.vmem %s3150_s26, %s2299_s23  ;;  %s2728_s21 = scalar_lea.vmem %s3137_s17, %s2297_s1 }
  0x16   : > { %s2718_s9 = scalar_lea.vmem %s3151_s10, %s2297_s1  ;;  %s2733_s24 = scalar_lea.vmem %s3138_s18, %s2299_s23 }
  0x17   : > { %683 = sbr.rel (%p2308_p5) target bundleno = 33 (0x21), region = 92 }
  0x1c   : > { %v684_v1 = vld [vmem:[%s3133_s13] sm:$0xff]  ;;  %vm685_vm0 = vcmask 130048  }
  0x1d   : > { %v687_v2 = vld [vmem:[%s3135_s15] sm:$0xff]  ;;  %686 = vst.msk [vmem:[#allocation4] sm:$0xff] %vm685_vm0, %v684_v1 }
  0x1e   : > { %v689_v3 = vld [vmem:[%s3134_s14] sm:$0xff]  ;;  %688 = vst.msk [vmem:[#allocation6] sm:$0xff] %vm685_vm0, %v687_v2 }
  0x1f   : > { %690 = vst.msk [vmem:[#allocation5] sm:$0xff] %vm685_vm0, %v689_v3  ;;  %v691_v4 = vld [vmem:[%s3136_s16] sm:$0xff] }
  0x20   : > { %692 = vst.msk [vmem:[#allocation7] sm:$0xff] %vm685_vm0, %v691_v4 }
  0x21 PF: > { %v698_v5 = vld [vmem:[%s3124_s4] sm:$0xff]  ;;  %vm706_vm1 = vcmask 64512   ;;  %v695_v7 = vld [vmem:[%s2708_s2 + $0x8] sm:$0xff]  ;;  %v696_v8 = vld [vmem:[%s2708_s2 + $0x10] sm:$0xff]  ;;  %v2590_v9 = vmov 0   ;;  %v2591_v19 = vmov 0.0  }
  0x22   : > { %v694_v6 = vld [vmem:[%s2708_s2] sm:$0xff]  ;;  %2407 = vmatprep.subr.mxu0 %v698_v5  ;;  %2516 = vset.pattern.permute.xlu0 %v2590_v9  ;;  %v697_v11 = vld [vmem:[%s2708_s2 + $0x18] sm:$0xff]  ;;  %v939_v13 = vld [vmem:[%s2713_s27 + $0x8] sm:$0xff]  ;;  %vm834_vm2 = vcmask 130048   ;;  %vm2592_vm3 = vmmov 0   ;;  %s2593_s26 = smov 16  }
  0x23   : > { %2409 = vmatprep.mubr.msk.f32.mxu0 %vm706_vm1, %v694_v6  ;;  %2408 = vmatpush3.msra.mxu0 %v698_v5  ;;  %v2314_v10 = vld [vmem:[#allocation8] ss:$0 sm:$0xff]  ;;  %v940_v14 = vld [vmem:[%s2713_s27 + $0x10] sm:$0xff]  ;;  %v941_v15 = vld [vmem:[%s2713_s27 + $0x18] sm:$0xff]  ;;  %s3152_s23 = sld [smem:[#allocation13_spill]]  ;;  %vm932_vm12 = vcmask 523264  }
  0x24   : > { %2410 = vmatmul.mubr.msk.f32.vlgmr.msra.gmra.mxu0 %vm706_vm1, %v695_v7  ;;  %2425 = vmatprep.subr.mxu0 %v698_v5  ;;  %v938_v12 = vld [vmem:[%s2713_s27] sm:$0xff]  ;;  %v826_v16 = vld [vmem:[%s3127_s7 + $0x8] sm:$0xff]  ;;  %s3153_s20 = sld [smem:[#allocation16_spill]]  ;;  %s2594_s1 = smov 96  }
  0x25   : > { %2426 = vmatpush3.msra.mxu0 %v698_v5  ;;  %2412 = vmatprep.mubr.msk.f32.mxu0 %vm706_vm1, %v696_v8  ;;  %v825_v17 = vld [vmem:[%s3127_s7] sm:$0xff]  ;;  %v1069_v18 = vld [vmem:[%s3128_s8 + $0x8] sm:$0xff]  ;;  %v1184_v23 = vld [vmem:[#allocation6] sm:$0xff]  ;;  %s3154_s10 = sld [smem:[#allocation14_spill]]  ;;  %s2596_s30 = smov 48  }
  0x26   : > { %814 = vperm.xlu0 %2516, %v2314_v10   ;;  %2517 = vset.pattern.permute.xlu1 %v2590_v9  ;;  %v2781_v20 = vld [vmem:[%s3131_s11 + $0x8] sm:$0xff]  ;;  %v2788_v21 = vld [vmem:[%s3131_s11] sm:$0xff]  ;;  %s3155_s5 = sld [smem:[#allocation15_spill]]  ;;  %s2597_s28 = smov 80  }
  0x27   : > { %2415 = vmatprep.subr.mxu1 %v826_v16  ;;  %2443 = vmatprep.subr.mxu0 %v2591_v19  ;;  %v2793_v22 = vld [vmem:[#allocation4] sm:$0xff]  ;;  %v2836_v62 = vld [vmem:[#allocation5] sm:$0xff] }
  0x28   : > { %2413 = vmatmul.mubr.msk.f32.gmra.mxu0 %vm706_vm1, %v697_v11  ;;  %2416 = vmatpush3.msra.mxu1 %v826_v16  ;;  %v1068_v40 = vld [vmem:[%s3128_s8] sm:$0xff] }
  0x29   : > { %2427 = vmatprep.mubr.msk.f32.mxu0 %vm706_vm1, %v938_v12  ;;  %2417 = vmatprep.subr.mxu1 %v825_v17  ;;  %v2309_v24 = vld [vmem:[%s3152_s23] ss:$0 sm:$0xff]  ;;  %s2595_s23 = smov 32  }
  0x2a   : > { %1057 = vperm.xlu0 %2516, %v2314_v10   ;;  %2418 = vmatpush3.msra.mxu1 %v825_v17  ;;  %v2819_v55 = vld [vmem:[%s3153_s20 + $0x8] sm:$0xff]  ;;  %v2826_v59 = vld [vmem:[%s3153_s20] sm:$0xff] }
  0x2b   : > { %2433 = vmatprep.subr.mxu1 %v1069_v18  ;;  %v2315_v1 = vld [vmem:[%s3154_s10] ss:$0 sm:$0xff] }
  0x2c   : > { %2428 = vmatmul.mubr.msk.f32.vlgmr.msra.gmra.mxu0 %vm706_vm1, %v939_v13  ;;  %v2326_v10 = vld [vmem:[%s3155_s5] ss:$0 sm:$0xff] }
  0x2d   : > { %2430 = vmatprep.mubr.msk.f32.mxu0 %vm706_vm1, %v940_v14  ;;  %2444 = vmatpush3.msra.mxu0 %v2781_v20 }
  0x2e   : > { %2445 = vmatprep.subr.mxu0 %v2591_v19  ;;  %1269 = vrot.lane.b32.xlu0 %v1184_v23, %s2593_s26 }
  0x2f   : > { %2446 = vmatpush3.msra.mxu0 %v2788_v21 }
  0x30   : > { %2431 = vmatmul.mubr.msk.f32.gmra.mxu0 %vm706_vm1, %v941_v15  ;;  %2457 = vmatprep.subr.mxu0 %v2591_v19 }
  0x31   : > { %2447 = vmatprep.mubr.msk.f32.mxu0 %vm2592_vm3, %v2591_v19 }
  0x34   : > { %2448 = vmatmul.mubr.msk.f32.vlgmr.msra.gmra.mxu0 %vm834_vm2, %v2793_v22 }
  0x35   : > { %2458 = vmatpush3.msra.mxu0 %v2781_v20  ;;  %2461 = vmatprep.mubr.msk.f32.mxu0 %vm2592_vm3, %v2591_v19 }
  0x36   : > { %2459 = vmatprep.subr.mxu0 %v2591_v19 }
  0x37   : > { %2460 = vmatpush3.msra.mxu0 %v2788_v21 }
  0x38   : > { %2471 = vmatprep.subr.mxu0 %v2591_v19 }
  0xa1   : > { %v815_v28 = vpop.permute.xlu0 %814 }
  0xa5   : > { %v1058_v44 = vpop.permute.xlu0 %1057 }
  0xe4   : > { %v2411_v25 = vpop.f32.mrf.mxu0 }
  0xe5   : > { %v791_v26 = vadd.f32 %v2411_v25, %v2309_v24 }
  0xe6   : > { %v785_v27 = vpop.f32.mrf.mxu0 }
  0xe7   : > { %v786_v29 = vadd.f32 %v2309_v24, %v785_v27  ;;  %v818_v30 = vmul.f32 %v815_v28, %v791_v26  ;;  %vm805_vm4 = vcmp.ge.f32.partialorder %v791_v26, 0.0 }
  0xe8   : > { %v2414_v31 = vpop.f32.mrf.mxu0 }
  0xe9   : > { %v801_v32 = vadd.f32 %v2414_v31, %v2309_v24  ;;  %vm804_vm5 = vcmp.ge.f32.partialorder %v786_v29, 0.0  ;;  %v817_v33 = vmul.f32 %v815_v28, %v786_v29  ;;  %v822_v39 = vsel %vm805_vm4, %v791_v26, %v818_v30 }
  0xea   : > { %v795_v34 = vpop.f32.mrf.mxu0 }
  0xeb   : > { %v796_v35 = vadd.f32 %v2309_v24, %v795_v34  ;;  %v821_v36 = vsel %vm804_vm5, %v786_v29, %v817_v33  ;;  %v820_v37 = vmul.f32 %v815_v28, %v801_v32  ;;  %vm807_vm6 = vcmp.ge.f32.partialorder %v801_v32, 0.0 }
  0xec   : > { %2419 = vmatprep.mubr.msk.f32.mxu1 %vm834_vm2, %v821_v36  ;;  %v2429_v38 = vpop.f32.mrf.mxu0 }
  0xed   : > { %vm806_vm7 = vcmp.ge.f32.partialorder %v796_v35, 0.0  ;;  %v819_v41 = vmul.f32 %v815_v28, %v796_v35  ;;  %v1034_v42 = vadd.f32 %v2429_v38, %v2309_v24  ;;  %2420 = vmatmul.mubr.msk.f32.vlgmr.msra.gmra.mxu1 %vm834_vm2, %v822_v39  ;;  %v824_v49 = vsel %vm807_vm6, %v801_v32, %v820_v37  ;;  %v1185_v32 = vld [vmem:[#allocation7] sm:$0xff]  ;;  %v1289_v39 = vld [vmem:[%s2718_s9] sm:$0xff] }
  0xee   : > { %v1028_v43 = vpop.f32.mrf.mxu0  ;;  %2434 = vmatpush3.msra.mxu1 %v1069_v18  ;;  %vm1290_vm13 = vcmp.gt.f32.partialorder %v1289_v39, 0.5 }
  0xef   : > { %v1029_v45 = vadd.f32 %v2309_v24, %v1028_v43  ;;  %v823_v46 = vsel %vm806_vm7, %v796_v35, %v819_v41  ;;  %2435 = vmatprep.subr.mxu1 %v1068_v40  ;;  %v1061_v47 = vmul.f32 %v1058_v44, %v1034_v42  ;;  %vm1048_vm8 = vcmp.ge.f32.partialorder %v1034_v42, 0.0 }
  0xf0   : > { %2422 = vmatprep.mubr.msk.f32.mxu1 %vm834_vm2, %v823_v46  ;;  %v2432_v48 = vpop.f32.mrf.mxu0  ;;  %2436 = vmatpush3.msra.mxu1 %v1068_v40  ;;  %v1291_v43 = vsel %vm1290_vm13, 1, %v2590_v9 }
  0xf1   : > { %vm1047_vm9 = vcmp.ge.f32.partialorder %v1029_v45, 0.0  ;;  %v1060_v50 = vmul.f32 %v1058_v44, %v1029_v45  ;;  %v1044_v51 = vadd.f32 %v2432_v48, %v2309_v24  ;;  %2423 = vmatmul.mubr.msk.f32.gmra.mxu1 %vm834_vm2, %v824_v49  ;;  %2450 = vmatprep.subr.mxu1 %v2591_v19  ;;  %v1065_v56 = vsel %vm1048_vm8, %v1034_v42, %v1061_v47  ;;  %v2869_v49 = vpop.permute.xlu0 %1269 }
  0xf2   : > { %v1038_v52 = vpop.f32.mrf.mxu0 }
  0xf3   : > { %v1039_v53 = vadd.f32 %v2309_v24, %v1038_v52  ;;  %v1064_v54 = vsel %vm1047_vm9, %v1029_v45, %v1060_v50  ;;  %v1063_v57 = vmul.f32 %v1058_v44, %v1044_v51  ;;  %vm1050_vm10 = vcmp.ge.f32.partialorder %v1044_v51, 0.0 }
  0xf4   : > { %2437 = vmatprep.mubr.msk.f32.mxu1 %vm834_vm2, %v1064_v54  ;;  %v1256_v63 = vpop.f32.mrf.mxu0 }
  0xf5   : > { %vm1049_vm11 = vcmp.ge.f32.partialorder %v1039_v53, 0.0  ;;  %v1062_v58 = vmul.f32 %v1058_v44, %v1039_v53  ;;  %2438 = vmatmul.mubr.msk.f32.vlgmr.msra.gmra.mxu1 %vm834_vm2, %v1065_v56  ;;  %v1067_v61 = vsel %vm1050_vm10, %v1044_v51, %v1063_v57  ;;  %v2335_v44 = vld [vmem:[%s2723_s0 + $0x18] sm:$0xff] }
  0xf6   : > { %2451 = vmatpush3.msra.mxu1 %v2819_v55  ;;  %v2449_v0 = vpop.f32.mrf.mxu0  ;;  %vm1413_vm14 = vcmp.gt.f32.partialorder %v2335_v44, 0.5 }
  0xf7   : > { %v1066_v60 = vsel %vm1049_vm11, %v1039_v53, %v1062_v58  ;;  %2452 = vmatprep.subr.mxu1 %v2591_v19  ;;  %v1414_v48 = vsel %vm1413_vm14, 1, %v2590_v9 }
  0xf8   : > { %2440 = vmatprep.mubr.msk.f32.mxu1 %vm834_vm2, %v1066_v60  ;;  %2453 = vmatpush3.msra.mxu1 %v2826_v59 }
  0xf9   : > { %2441 = vmatmul.mubr.msk.f32.gmra.mxu1 %vm834_vm2, %v1067_v61  ;;  %2464 = vmatprep.subr.mxu1 %v2591_v19 }
  0xfa   : > { %2454 = vmatprep.mubr.msk.f32.mxu1 %vm2592_vm3, %v2591_v19 }
  0xfd   : > { %2455 = vmatmul.mubr.msk.f32.vlgmr.msra.gmra.mxu1 %vm834_vm2, %v2836_v62 }
  0xfe   : > { %2465 = vmatpush3.msra.mxu1 %v2819_v55  ;;  %2468 = vmatprep.mubr.msk.f32.mxu1 %vm2592_vm3, %v2591_v19 }
  0xff   : > { %2466 = vmatprep.subr.mxu1 %v2591_v19 }
 0x100   : > { %2467 = vmatpush3.msra.mxu1 %v2826_v59 }
 0x101   : > { %2478 = vmatprep.subr.mxu1 %v2591_v19 }
 0x1ad   : > { %v2421_v2 = vpop.f32.mrf.mxu1 }
 0x1ae   : > { %v919_v3 = vadd.f32 %v2421_v2, %v2315_v1 }
 0x1af   : > { %v913_v4 = vpop.f32.mrf.mxu1 }
 0x1b0   : > { %934 = vst.msk [vmem:[#allocation2 + $0x8] sm:$0xff] %vm932_vm12, %v919_v3  ;;  %v914_v5 = vadd.f32 %v2315_v1, %v913_v4 }
 0x1b1   : > { %v2424_v6 = vpop.f32.mrf.mxu1 }
 0x1b2   : > { %933 = vst.msk [vmem:[#allocation2] sm:$0xff] %vm932_vm12, %v914_v5  ;;  %v929_v7 = vadd.f32 %v2424_v6, %v2315_v1 }
 0x1b3   : > { %v923_v8 = vpop.f32.mrf.mxu1 }
 0x1b4   : > { %936 = vst.msk [vmem:[#allocation2 + $0x18] sm:$0xff] %vm932_vm12, %v929_v7  ;;  %v924_v11 = vadd.f32 %v2315_v1, %v923_v8 }
 0x1b5   : > { %v2439_v12 = vpop.f32.mrf.mxu1 }
 0x1b6   : > { %935 = vst.msk [vmem:[#allocation2 + $0x10] sm:$0xff] %vm932_vm12, %v924_v11  ;;  %v1161_v13 = vadd.f32 %v2439_v12, %v2326_v10 }
 0x1b7   : > { %v1155_v14 = vpop.f32.mrf.mxu1  ;;  %v1432_v8 = vld [vmem:[#allocation2 + $0x8] sm:$0xff] }
 0x1b8   : > { %1175 = vst.msk [vmem:[#allocation3 + $0x8] sm:$0xff] %vm932_vm12, %v1161_v13  ;;  %v1156_v15 = vadd.f32 %v2326_v10, %v1155_v14 }
 0x1b9   : > { %v2442_v16 = vpop.f32.mrf.mxu1  ;;  %v1186_v17 = vld [vmem:[#allocation2] sm:$0xff] }
 0x1ba   : > { %1174 = vst.msk [vmem:[#allocation3] sm:$0xff] %vm932_vm12, %v1156_v15  ;;  %v1171_v18 = vadd.f32 %v2442_v16, %v2326_v10  ;;  %v1260_v23 = vadd.f32 %v1256_v63, %v1186_v17 }
 0x1bb   : > { %v1165_v24 = vpop.f32.mrf.mxu1 }
 0x1bc   : > { %1177 = vst.msk [vmem:[#allocation3 + $0x18] sm:$0xff] %vm932_vm12, %v1171_v18  ;;  %2518 = vtanh.f32 %v1260_v23  ;;  %v1166_v25 = vadd.f32 %v2326_v10, %v1165_v24  ;;  %v2332_v33 = vmul.f32 -1.442695, %v1260_v23 }
 0x1bd   : > { %v1378_v26 = vpop.f32.mrf.mxu1 }
 0x1be   : > { %1176 = vst.msk [vmem:[#allocation3 + $0x10] sm:$0xff] %vm932_vm12, %v1166_v25 }
 0x1bf   : > { %v2456_v27 = vpop.f32.mrf.mxu1 }
 0x1c3   : > { %v1308_v28 = vld [vmem:[#allocation3 + $0x18] sm:$0xff] }
 0x1c4   : > { %v1382_v29 = vadd.f32 %v1378_v26, %v1308_v28 }
 0x1c5   : > { %v1551_v13 = vld [vmem:[#allocation3 + $0x10] sm:$0xff] }
 0x1c6   : > { %2520 = vtanh.f32 %v1382_v29  ;;  %v2334_v34 = vmul.f32 -1.442695, %v1382_v29  ;;  %v2339_v29 = vld [vmem:[%s2718_s9 + $0x8] sm:$0xff] }
 0x1c7   : > { %2522 = vpow2.f32 %v2332_v33  ;;  %vm1535_vm1 = vcmp.gt.f32.partialorder %v2339_v29, 0.5 }
 0x1c8   : > { %2524 = vpow2.f32 %v2334_v34  ;;  %v1536_v33 = vsel %vm1535_vm1, 1, %v2590_v9  ;;  %v2343_v34 = vld [vmem:[%s2723_s0 + $0x10] sm:$0xff] }
 0x1c9   : > { %v2519_v30 = vpop.eup %2518  ;;  %vm1654_vm4 = vcmp.gt.f32.partialorder %v2343_v34, 0.5 }
 0x1ca   : > { %1274 = vrot.lane.b32.xlu1 %v2519_v30, %s2594_s1 }
 0x1d3   : > { %v2521_v31 = vpop.eup %2520 }
 0x1d4   : > { %1396 = vrot.lane.b32.xlu1 %v2521_v31, %s2594_s1  ;;  %v2523_v35 = vpop.eup %2522 }
 0x1d5   : > { %v1264_v36 = vadd.f32 1.0, %v2523_v35  ;;  %v2525_v37 = vpop.eup %2524 }
 0x1d6   : > { %v1386_v38 = vadd.f32 1.0, %v2525_v37 }
 0x1d7   : > { %2526 = vrcp.f32 %v1264_v36 }
 0x1d8   : > { %1391 = vrot.lane.b32.xlu1 %v1185_v32, %s2593_s26  ;;  %2528 = vrcp.f32 %v1386_v38  ;;  %v1655_v38 = vsel %vm1654_vm4, 1, %v2590_v9 }
 0x1e4   : > { %v2527_v40 = vpop.eup %2526 }
 0x1e5   : > { %v2529_v45 = vpop.eup %2528  ;;  %v1272_v50 = vmul.f32 %v2527_v40, %v2869_v49 }
 0x23c   : > { %v1275_v41 = vpop.permute.xlu1 %1274 }
 0x23d   : > { %v1277_v42 = vmul.f32 %v2527_v40, %v1275_v41 }
 0x23f   : > { %1279 = vrot.lane.b32.xlu0 %v1277_v42, %s2593_s26 }
 0x243   : > { %1293 = vperm.xlu0 %2516, %v1291_v43  }
 0x246   : > { %v1397_v46 = vpop.permute.xlu1 %1396 }
 0x247   : > { %v1399_v47 = vmul.f32 %v2529_v45, %v1397_v46 }
 0x249   : > { %1401 = vrot.lane.b32.xlu1 %v1399_v47, %s2593_s26 }
 0x24a   : > { %v2875_v53 = vpop.permute.xlu1 %1391 }
 0x24b   : > { %v1394_v54 = vmul.f32 %v2529_v45, %v2875_v53 }
 0x24d   : > { %1416 = vperm.xlu1 %2517, %v1414_v48  }
 0x2b1   : > { %v1280_v51 = vpop.permute.xlu0 %1279 }
 0x2b2   : > { %v2872_v52 = vadd.f32 %v1280_v51, %v1272_v50 }
 0x2b4   : > { %2530 = vtanh.f32 %v2872_v52 }
 0x2bb   : > { %v1402_v56 = vpop.permute.xlu1 %1401 }
 0x2bc   : > { %v2878_v57 = vadd.f32 %v1402_v56, %v1394_v54 }
 0x2be   : > { %2532 = vtanh.f32 %v2878_v57  ;;  %v2885_v61 = vpop.permute.xlu0 %1293 }
 0x2bf   : > { %vm1295_vm15 = vcmp.eq.s32.totalorder %v2885_v61, 1 }
 0x2c0   : > { %v2935_v39 = vsel %vm1295_vm15, %v2872_v52, %v2869_v49 }
 0x2c1   : > { %v2531_v58 = vpop.eup %2530 }
 0x2c2   : > { %1285 = vrot.lane.b32.xlu0 %v2531_v58, %s2595_s23 }
 0x2c6   : > { %1302 = vrot.lane.b32.xlu0 %v2793_v22, %s2596_s30 }
 0x2c8   : > { %v2895_v3 = vpop.permute.xlu1 %1416 }
 0x2c9   : > { %vm1418_vm0 = vcmp.eq.s32.totalorder %v2895_v3, 1 }
 0x2ca   : > { %v2945_v43 = vsel %vm1418_vm0, %v2878_v57, %v2875_v53 }
 0x2cb   : > { %v2533_v60 = vpop.eup %2532 }
 0x2cc   : > { %1407 = vrot.lane.b32.xlu1 %v2533_v60, %s2595_s23 }
 0x2d0   : > { %1426 = vrot.lane.b32.xlu1 %v2836_v62, %s2596_s30 }
 0x334   : > { %v1286_v63 = vpop.permute.xlu0 %1285 }
 0x335   : > { %v2887_v0 = vmul.f32 %v2527_v40, %v1286_v63 }
 0x338   : > { %v1303_v1 = vpop.permute.xlu0 %1302 }
 0x339   : > { %v2893_v2 = vsel %vm1295_vm15, %v2887_v0, %v1303_v1 }
 0x33a   : > { %1434 = vrot.lane.b32.xlu0 %v2893_v2, %s2597_s28 }
 0x33e   : > { %v1408_v22 = vpop.permute.xlu1 %1407 }
 0x33f   : > { %v2899_v62 = vmul.f32 %v2529_v45, %v1408_v22  ;;  %v1789_v22 = vld [vmem:[#allocation3 + $0x8] sm:$0xff] }
 0x341   : > { %v1419_v61 = vsel %vm1418_vm0, %v2899_v62, 0.0 }
 0x342   : > { %v1427_v4 = vpop.permute.xlu1 %1426 }
 0x343   : > { %v2905_v5 = vsel %vm1418_vm0, %v2899_v62, %v1427_v4 }
 0x344   : > { %1553 = vrot.lane.b32.xlu1 %v2905_v5, %s2597_s28 }
 0x3ac   : > { %v1435_v6 = vpop.permute.xlu0 %1434 }
 0x3ad   : > { %2462 = vmatmul.mubr.msk.f32.vlgmr.msra.gmra.mxu0 %vm834_vm2, %v1435_v6 }
 0x3ae   : > { %2472 = vmatpush3.msra.mxu0 %v2781_v20  ;;  %2475 = vmatprep.mubr.msk.f32.mxu0 %vm2592_vm3, %v2591_v19 }
 0x3af   : > { %2473 = vmatprep.subr.mxu0 %v2591_v19 }
 0x3b0   : > { %2474 = vmatpush3.msra.mxu0 %v2788_v21 }
 0x3b1   : > { %2485 = vmatprep.subr.mxu0 %v2591_v19 }
 0x3b6   : > { %v1554_v7 = vpop.permute.xlu1 %1553 }
 0x3b7   : > { %2469 = vmatmul.mubr.msk.f32.vlgmr.msra.gmra.mxu1 %vm834_vm2, %v1554_v7 }
 0x3b8   : > { %2479 = vmatpush3.msra.mxu1 %v2819_v55  ;;  %2482 = vmatprep.mubr.msk.f32.mxu1 %vm2592_vm3, %v2591_v19 }
 0x3b9   : > { %2480 = vmatprep.subr.mxu1 %v2591_v19 }
 0x3ba   : > { %2481 = vmatpush3.msra.mxu1 %v2826_v59 }
 0x3bb   : > { %2492 = vmatprep.subr.mxu1 %v2591_v19 }
 0x46d   : > { %v1504_v10 = vpop.f32.mrf.mxu0 }
 0x46e   : > { %v1508_v11 = vadd.f32 %v1504_v10, %v1432_v8 }
 0x46f   : > { %v2463_v12 = vpop.f32.mrf.mxu0 }
 0x470   : > { %2534 = vtanh.f32 %v1508_v11  ;;  %v2338_v23 = vmul.f32 -1.442695, %v1508_v11  ;;  %v2347_v12 = vld [vmem:[%s2718_s9 + $0x10] sm:$0xff] }
 0x477   : > { %v1623_v14 = vpop.f32.mrf.mxu1 }
 0x478   : > { %v1627_v15 = vadd.f32 %v1623_v14, %v1551_v13 }
 0x479   : > { %v2470_v16 = vpop.f32.mrf.mxu1 }
 0x47a   : > { %2536 = vtanh.f32 %v1627_v15  ;;  %v2342_v24 = vmul.f32 -1.442695, %v1627_v15 }
 0x47b   : > { %2538 = vpow2.f32 %v2338_v23 }
 0x47c   : > { %2540 = vpow2.f32 %v2342_v24 }
 0x47d   : > { %v2535_v17 = vpop.eup %2534 }
 0x47e   : > { %1518 = vrot.lane.b32.xlu0 %v2535_v17, %s2594_s1  ;;  %v2351_v17 = vld [vmem:[%s2723_s0 + $0x8] sm:$0xff] }
 0x47f   : > { %vm1892_vm7 = vcmp.gt.f32.partialorder %v2351_v17, 0.5 }
 0x487   : > { %v2537_v18 = vpop.eup %2536 }
 0x488   : > { %1637 = vrot.lane.b32.xlu1 %v2537_v18, %s2594_s1  ;;  %v2539_v25 = vpop.eup %2538 }
 0x489   : > { %v1512_v26 = vadd.f32 1.0, %v2539_v25  ;;  %v2541_v27 = vpop.eup %2540  ;;  %v1893_v25 = vsel %vm1892_vm7, 1, %v2590_v9 }
 0x48a   : > { %v1631_v28 = vadd.f32 1.0, %v2541_v27 }
 0x48b   : > { %2542 = vrcp.f32 %v1512_v26 }
 0x48c   : > { %2544 = vrcp.f32 %v1631_v28 }
 0x498   : > { %v2543_v30 = vpop.eup %2542 }
 0x499   : > { %v2545_v35 = vpop.eup %2544  ;;  %v1516_v40 = vmul.f32 %v2543_v30, %v2935_v39 }
 0x49a   : > { %v1635_v44 = vmul.f32 %v2545_v35, %v2945_v43 }
 0x4f0   : > { %v1519_v31 = vpop.permute.xlu0 %1518 }
 0x4f1   : > { %v1521_v32 = vmul.f32 %v2543_v30, %v1519_v31 }
 0x4f3   : > { %1523 = vrot.lane.b32.xlu0 %v1521_v32, %s2593_s26 }
 0x4f7   : > { %1538 = vperm.xlu0 %2516, %v1536_v33  }
 0x4fa   : > { %v1638_v36 = vpop.permute.xlu1 %1637 }
 0x4fb   : > { %v1640_v37 = vmul.f32 %v2545_v35, %v1638_v36 }
 0x4fd   : > { %1642 = vrot.lane.b32.xlu1 %v1640_v37, %s2593_s26 }
 0x501   : > { %1657 = vperm.xlu1 %2517, %v1655_v38  }
 0x565   : > { %v1524_v41 = vpop.permute.xlu0 %1523 }
 0x566   : > { %v2938_v42 = vadd.f32 %v1524_v41, %v1516_v40 }
 0x568   : > { %2546 = vtanh.f32 %v2938_v42 }
 0x56f   : > { %v1643_v45 = vpop.permute.xlu1 %1642 }
 0x570   : > { %v2948_v46 = vadd.f32 %v1643_v45, %v1635_v44 }
 0x572   : > { %2548 = vtanh.f32 %v2948_v46  ;;  %v2953_v49 = vpop.permute.xlu0 %1538 }
 0x573   : > { %vm1540_vm5 = vcmp.eq.s32.totalorder %v2953_v49, 1 }
 0x574   : > { %v3003_v26 = vsel %vm1540_vm5, %v2938_v42, %v2935_v39 }
 0x575   : > { %v2547_v47 = vpop.eup %2546 }
 0x576   : > { %1529 = vrot.lane.b32.xlu0 %v2547_v47, %s2595_s23 }
 0x57c   : > { %v2966_v53 = vpop.permute.xlu1 %1657 }
 0x57d   : > { %vm1659_vm6 = vcmp.eq.s32.totalorder %v2966_v53, 1 }
 0x57f   : > { %v2549_v48 = vpop.eup %2548 }
 0x580   : > { %1648 = vrot.lane.b32.xlu1 %v2549_v48, %s2595_s23 }
 0x5e8   : > { %v1530_v50 = vpop.permute.xlu0 %1529 }
 0x5e9   : > { %v2955_v51 = vmul.f32 %v2543_v30, %v1530_v50  ;;  %v3013_v30 = vsel %vm1659_vm6, %v2948_v46, %v2945_v43  ;;  %v1908_v46 = vld [vmem:[#allocation2 + $0x18] sm:$0xff] }
 0x5eb   : > { %v2962_v52 = vsel %vm1540_vm5, %v2955_v51, %v2893_v2 }
 0x5ec   : > { %1672 = vrot.lane.b32.xlu0 %v2962_v52, %s2597_s28 }
 0x5f2   : > { %v1649_v54 = vpop.permute.xlu1 %1648 }
 0x5f3   : > { %v2968_v56 = vmul.f32 %v2545_v35, %v1649_v54 }
 0x5f5   : > { %v2975_v57 = vsel %vm1659_vm6, %v2968_v56, %v2905_v5 }
 0x5f6   : > { %1791 = vrot.lane.b32.xlu1 %v2975_v57, %s2597_s28 }
 0x65e   : > { %v1673_v58 = vpop.permute.xlu0 %1672 }
 0x65f   : > { %2476 = vmatmul.mubr.msk.f32.vlgmr.msra.gmra.mxu0 %vm834_vm2, %v1673_v58 }
 0x660   : > { %2486 = vmatpush3.msra.mxu0 %v2781_v20  ;;  %2489 = vmatprep.mubr.msk.f32.mxu0 %vm2592_vm3, %v2591_v19  ;;  %v1670_v20 = vld [vmem:[#allocation2 + $0x10] sm:$0xff] }
 0x661   : > { %2487 = vmatprep.subr.mxu0 %v2591_v19 }
 0x662   : > { %2488 = vmatpush3.msra.mxu0 %v2788_v21 }
 0x668   : > { %v1792_v60 = vpop.permute.xlu1 %1791 }
 0x669   : > { %2483 = vmatmul.mubr.msk.f32.vlgmr.msra.gmra.mxu1 %vm834_vm2, %v1792_v60 }
 0x66a   : > { %2493 = vmatpush3.msra.mxu1 %v2819_v55  ;;  %2496 = vmatprep.mubr.msk.f32.mxu1 %vm2592_vm3, %v2591_v19  ;;  %vm1773_vm3 = vcmp.gt.f32.partialorder %v2347_v12, 0.5 }
 0x66b   : > { %2494 = vmatprep.subr.mxu1 %v2591_v19  ;;  %v1774_v16 = vsel %vm1773_vm3, 1, %v2590_v9 }
 0x66c   : > { %2495 = vmatpush3.msra.mxu1 %v2826_v59 }
 0x71f   : > { %v1742_v63 = vpop.f32.mrf.mxu0 }
 0x720   : > { %v1746_v1 = vadd.f32 %v1742_v63, %v1670_v20 }
 0x721   : > { %v2477_v2 = vpop.f32.mrf.mxu0 }
 0x722   : > { %2550 = vtanh.f32 %v1746_v1  ;;  %v2346_v19 = vmul.f32 -1.442695, %v1746_v1 }
 0x729   : > { %v1861_v4 = vpop.f32.mrf.mxu1 }
 0x72a   : > { %v1865_v21 = vadd.f32 %v1861_v4, %v1789_v22 }
 0x72b   : > { %v2484_v5 = vpop.f32.mrf.mxu1 }
 0x72c   : > { %2552 = vtanh.f32 %v1865_v21  ;;  %v2350_v59 = vmul.f32 -1.442695, %v1865_v21  ;;  %v2355_v5 = vld [vmem:[%s2718_s9 + $0x18] sm:$0xff]  ;;  %s2598_s9 = smov 112  }
 0x72d   : > { %2554 = vpow2.f32 %v2346_v19  ;;  %vm2011_vm10 = vcmp.gt.f32.partialorder %v2355_v5, 0.5 }
 0x72e   : > { %2556 = vpow2.f32 %v2350_v59  ;;  %v2012_v59 = vsel %vm2011_vm10, 1, %v2590_v9 }
 0x72f   : > { %v2551_v6 = vpop.eup %2550 }
 0x730   : > { %1756 = vrot.lane.b32.xlu0 %v2551_v6, %s2594_s1 }
 0x739   : > { %v2553_v55 = vpop.eup %2552 }
 0x73a   : > { %1875 = vrot.lane.b32.xlu1 %v2553_v55, %s2594_s1  ;;  %v2555_v7 = vpop.eup %2554 }
 0x73b   : > { %v1750_v8 = vadd.f32 1.0, %v2555_v7  ;;  %v2557_v10 = vpop.eup %2556  ;;  %v2127_v7 = vld [vmem:[%s2723_s0] sm:$0xff] }
 0x73c   : > { %v1869_v11 = vadd.f32 1.0, %v2557_v10  ;;  %vm2128_vm11 = vcmp.gt.f32.partialorder %v2127_v7, 0.5 }
 0x73d   : > { %2558 = vrcp.f32 %v1750_v8  ;;  %v2129_v12 = vsel %vm2128_vm11, 1, %v2590_v9 }
 0x73e   : > { %2560 = vrcp.f32 %v1869_v11 }
 0x74a   : > { %v2559_v13 = vpop.eup %2558 }
 0x74b   : > { %v2561_v18 = vpop.eup %2560  ;;  %v1754_v27 = vmul.f32 %v2559_v13, %v3003_v26 }
 0x74c   : > { %v1873_v31 = vmul.f32 %v2561_v18, %v3013_v30 }
 0x7a2   : > { %v1757_v14 = vpop.permute.xlu0 %1756 }
 0x7a3   : > { %v1759_v15 = vmul.f32 %v2559_v13, %v1757_v14 }
 0x7a5   : > { %1761 = vrot.lane.b32.xlu0 %v1759_v15, %s2593_s26 }
 0x7a9   : > { %1776 = vperm.xlu0 %2516, %v1774_v16  }
 0x7ac   : > { %v1876_v23 = vpop.permute.xlu1 %1875 }
 0x7ad   : > { %v1878_v24 = vmul.f32 %v2561_v18, %v1876_v23 }
 0x7af   : > { %1880 = vrot.lane.b32.xlu1 %v1878_v24, %s2593_s26 }
 0x7b3   : > { %1895 = vperm.xlu1 %2517, %v1893_v25   ;;  %v1296_v25 = vsel %vm1295_vm15, %v2887_v0, 0.0  ;;  %v1660_v0 = vsel %vm1659_vm6, %v2968_v56, 0.0 }
 0x817   : > { %v1762_v28 = vpop.permute.xlu0 %1761 }
 0x818   : > { %v3006_v29 = vadd.f32 %v1762_v28, %v1754_v27 }
 0x81a   : > { %2562 = vtanh.f32 %v3006_v29 }
 0x821   : > { %v1881_v32 = vpop.permute.xlu1 %1880 }
 0x822   : > { %v3016_v33 = vadd.f32 %v1881_v32, %v1873_v31 }
 0x824   : > { %2564 = vtanh.f32 %v3016_v33  ;;  %v3021_v36 = vpop.permute.xlu0 %1776 }
 0x825   : > { %vm1778_vm8 = vcmp.eq.s32.totalorder %v3021_v36, 1 }
 0x827   : > { %v2563_v34 = vpop.eup %2562 }
 0x828   : > { %1767 = vrot.lane.b32.xlu0 %v2563_v34, %s2595_s23 }
 0x82e   : > { %v3034_v40 = vpop.permute.xlu1 %1895 }
 0x82f   : > { %vm1897_vm9 = vcmp.eq.s32.totalorder %v3034_v40, 1 }
 0x830   : > { %v1906_v17 = vsel %vm1897_vm9, %v3016_v33, %v3013_v30 }
 0x831   : > { %v2565_v35 = vpop.eup %2564 }
 0x832   : > { %1886 = vrot.lane.b32.xlu1 %v2565_v35, %s2595_s23 }
 0x89a   : > { %v1768_v37 = vpop.permute.xlu0 %1767 }
 0x89b   : > { %v3023_v38 = vmul.f32 %v2559_v13, %v1768_v37  ;;  %v1787_v13 = vsel %vm1778_vm8, %v3006_v29, %v3003_v26  ;;  %v1541_v26 = vsel %vm1540_vm5, %v2955_v51, 0.0 }
 0x89d   : > { %v3030_v39 = vsel %vm1778_vm8, %v3023_v38, %v2962_v52  ;;  %v2026_v52 = vld [vmem:[#allocation3] sm:$0xff]  ;;  %v1779_v28 = vsel %vm1778_vm8, %v3023_v38, 0.0 }
 0x89e   : > { %1910 = vrot.lane.b32.xlu0 %v3030_v39, %s2597_s28 }
 0x8a4   : > { %v1887_v41 = vpop.permute.xlu1 %1886 }
 0x8a5   : > { %v3036_v42 = vmul.f32 %v2561_v18, %v1887_v41 }
 0x8a7   : > { %v3043_v43 = vsel %vm1897_vm9, %v3036_v42, %v2975_v57  ;;  %v1898_v51 = vsel %vm1897_vm9, %v3036_v42, 0.0 }
 0x8a8   : > { %2028 = vrot.lane.b32.xlu1 %v3043_v43, %s2597_s28 }
 0x910   : > { %v1911_v44 = vpop.permute.xlu0 %1910 }
 0x911   : > { %2490 = vmatmul.mubr.msk.f32.vlgmr.msra.gmra.mxu0 %vm834_vm2, %v1911_v44 }
 0x91a   : > { %v2029_v45 = vpop.permute.xlu1 %2028 }
 0x91b   : > { %2497 = vmatmul.mubr.msk.f32.vlgmr.msra.gmra.mxu1 %vm834_vm2, %v2029_v45 }
 0x9d1   : > { %v1980_v47 = vpop.f32.mrf.mxu0 }
 0x9d2   : > { %v1984_v48 = vadd.f32 %v1980_v47, %v1908_v46 }
 0x9d3   : > { %v2491_v50 = vpop.f32.mrf.mxu0 }
 0x9d4   : > { %2566 = vtanh.f32 %v1984_v48  ;;  %v2354_v63 = vmul.f32 -1.442695, %v1984_v48 }
 0x9db   : > { %v2098_v54 = vpop.f32.mrf.mxu1 }
 0x9dc   : > { %v2102_v58 = vadd.f32 %v2098_v54, %v2026_v52 }
 0x9dd   : > { %v2498_v60 = vpop.f32.mrf.mxu1 }
 0x9de   : > { %2568 = vtanh.f32 %v2102_v58  ;;  %v2358_v1 = vmul.f32 -1.442695, %v2102_v58 }
 0x9df   : > { %2570 = vpow2.f32 %v2354_v63 }
 0x9e0   : > { %2572 = vpow2.f32 %v2358_v1 }
 0x9e1   : > { %v2567_v57 = vpop.eup %2566 }
 0x9e2   : > { %1994 = vrot.lane.b32.xlu0 %v2567_v57, %s2594_s1 }
 0x9eb   : > { %v2569_v20 = vpop.eup %2568 }
 0x9ec   : > { %2112 = vrot.lane.b32.xlu1 %v2569_v20, %s2594_s1  ;;  %v2571_v2 = vpop.eup %2570 }
 0x9ed   : > { %v1988_v22 = vadd.f32 1.0, %v2571_v2  ;;  %v2573_v4 = vpop.eup %2572 }
 0x9ee   : > { %v2106_v21 = vadd.f32 1.0, %v2573_v4 }
 0x9ef   : > { %2574 = vrcp.f32 %v1988_v22 }
 0x9f0   : > { %2576 = vrcp.f32 %v2106_v21 }
 0x9fc   : > { %v2575_v6 = vpop.eup %2574 }
 0x9fd   : > { %v2577_v8 = vpop.eup %2576  ;;  %v1992_v14 = vmul.f32 %v2575_v6, %v1787_v13 }
 0x9fe   : > { %v2110_v18 = vmul.f32 %v2577_v8, %v1906_v17 }
 0xa54   : > { %v1995_v55 = vpop.permute.xlu0 %1994 }
 0xa55   : > { %v1997_v19 = vmul.f32 %v2575_v6, %v1995_v55 }
 0xa57   : > { %1999 = vrot.lane.b32.xlu0 %v1997_v19, %s2593_s26 }
 0xa5b   : > { %2014 = vperm.xlu0 %2516, %v2012_v59  }
 0xa5e   : > { %v2113_v10 = vpop.permute.xlu1 %2112 }
 0xa5f   : > { %v2115_v11 = vmul.f32 %v2577_v8, %v2113_v10 }
 0xa61   : > { %2117 = vrot.lane.b32.xlu1 %v2115_v11, %s2593_s26 }
 0xa65   : > { %2131 = vperm.xlu1 %2517, %v2129_v12  }
 0xac9   : > { %v2000_v15 = vpop.permute.xlu0 %1999 }
 0xaca   : > { %v2002_v16 = vadd.f32 %v2000_v15, %v1992_v14 }
 0xacc   : > { %2578 = vtanh.f32 %v2002_v16 }
 0xad3   : > { %v2118_v23 = vpop.permute.xlu1 %2117 }
 0xad4   : > { %v2120_v24 = vadd.f32 %v2118_v23, %v2110_v18 }
 0xad6   : > { %2580 = vtanh.f32 %v2120_v24  ;;  %v2015_v49 = vpop.permute.xlu0 %2014 }
 0xad7   : > { %vm2016_vm12 = vcmp.eq.s32.totalorder %v2015_v49, 1 }
 0xad8   : > { %v2025_v3 = vsel %vm2016_vm12, %v2002_v16, %v1787_v13 }
 0xad9   : > { %v2579_v9 = vpop.eup %2578 }
 0xada   : > { %2005 = vrot.lane.b32.xlu0 %v2579_v9, %s2595_s23 }
 0xade   : > { %1298 = vrot.lane.b32.xlu0 %v1296_v25, %s2597_s28 }
 0xae0   : > { %v2132_v56 = vpop.permute.xlu1 %2131 }
 0xae1   : > { %vm2133_vm13 = vcmp.eq.s32.totalorder %v2132_v56, 1 }
 0xae2   : > { %1543 = vrot.lane.b32.xlu0 %v1541_v26, %s2597_s28 }
 0xae3   : > { %v2581_v27 = vpop.eup %2580 }
 0xae4   : > { %2123 = vrot.lane.b32.xlu1 %v2581_v27, %s2595_s23 }
 0xae6   : > { %1781 = vrot.lane.b32.xlu0 %v1779_v28, %s2597_s28 }
 0xae8   : > { %1421 = vrot.lane.b32.xlu1 %v1419_v61, %s2597_s28 }
 0xaec   : > { %1662 = vrot.lane.b32.xlu1 %v1660_v0, %s2597_s28 }
 0xaf0   : > { %1900 = vrot.lane.b32.xlu1 %v1898_v51, %s2597_s28 }
 0xaf4   : > { %2148 = vrot.lane.b32.xlu1 %v2025_v3, %s2598_s9 }
 0xb4c   : > { %v2006_v62 = vpop.permute.xlu0 %2005 }
 0xb4d   : > { %v2008_v29 = vmul.f32 %v2575_v6, %v2006_v62 }
 0xb4f   : > { %v2017_v30 = vsel %vm2016_vm12, %v2008_v29, 0.0  ;;  %v2024_v31 = vsel %vm2016_vm12, %v2008_v29, %v3030_v39  ;;  %v2141_v39 = vsel %vm2133_vm13, %v2120_v24, %v1906_v17 }
 0xb50   : > { %2019 = vrot.lane.b32.xlu0 %v2017_v30, %s2597_s28  ;;  %v1299_v53 = vpop.permute.xlu0 %1298 }
 0xb51   : > { %1301 = vst.msk [vmem:[%s2728_s21] sm:$0xff] %vm834_vm2, %v1299_v53 }
 0xb54   : > { %2143 = vrot.lane.b32.xlu0 %v2024_v31, %s2597_s28  ;;  %v1544_v32 = vpop.permute.xlu0 %1543 }
 0xb55   : > { %2340 = vst.msk [vmem:[%s2728_s21 + $0x8] sm:$0xff] %vm834_vm2, %v1544_v32 }
 0xb56   : > { %v2124_v33 = vpop.permute.xlu1 %2123 }
 0xb57   : > { %v2126_v34 = vmul.f32 %v2577_v8, %v2124_v33 }
 0xb58   : > { %v1782_v35 = vpop.permute.xlu0 %1781 }
 0xb59   : > { %2348 = vst.msk [vmem:[%s2728_s21 + $0x10] sm:$0xff] %vm834_vm2, %v1782_v35  ;;  %v2134_v36 = vsel %vm2133_vm13, %v2126_v34, 0.0  ;;  %v2140_v37 = vsel %vm2133_vm13, %v2126_v34, %v3043_v43 }
 0xb5a   : > { %v1422_v38 = vpop.permute.xlu1 %1421  ;;  %2136 = vrot.lane.b32.xlu1 %v2134_v36, %s2597_s28  ;;  %2153 = vrot.lane.b32.xlu0 %v2140_v37, %s2597_s28 }
 0xb5b   : > { %2336 = vst.msk [vmem:[%s2733_s24 + $0x18] sm:$0xff] %vm834_vm2, %v1422_v38 }
 0xb5e   : > { %v1663_v40 = vpop.permute.xlu1 %1662  ;;  %2158 = vrot.lane.b32.xlu1 %v2141_v39, %s2598_s9 }
 0xb5f   : > { %2344 = vst.msk [vmem:[%s2733_s24 + $0x10] sm:$0xff] %vm834_vm2, %v1663_v40 }
 0xb62   : > { %v1901_v41 = vpop.permute.xlu1 %1900 }
 0xb63   : > { %2352 = vst.msk [vmem:[%s2733_s24 + $0x8] sm:$0xff] %vm834_vm2, %v1901_v41 }
 0xb66   : > { %v2149_v42 = vpop.permute.xlu1 %2148 }
 0xb67   : > { %2151 = vst.msk [vmem:[#allocation6] sm:$0xff] %vm834_vm2, %v2149_v42 }
 0xbc2   : > { %v2020_v43 = vpop.permute.xlu0 %2019 }
 0xbc3   : > { %2356 = vst.msk [vmem:[%s2728_s21 + $0x18] sm:$0xff] %vm834_vm2, %v2020_v43 }
 0xbc6   : > { %v2144_v44 = vpop.permute.xlu0 %2143 }
 0xbc7   : > { %2146 = vst.msk [vmem:[#allocation4] sm:$0xff] %vm834_vm2, %v2144_v44 }
 0xbcc   : > { %v2137_v45 = vpop.permute.xlu1 %2136  ;;  %v2154_v46 = vpop.permute.xlu0 %2153 }
 0xbcd   : > { %2139 = vst.msk [vmem:[%s2733_s24] sm:$0xff] %vm834_vm2, %v2137_v45  ;;  %2156 = vst.msk [vmem:[#allocation5] sm:$0xff] %vm834_vm2, %v2154_v46 }
 0xbd0   : > { %v2159_v47 = vpop.permute.xlu1 %2158 }
 0xbd1   : > { %2161 = vst.msk [vmem:[#allocation7] sm:$0xff] %vm834_vm2, %v2159_v47 }
 0xbd2 PF: > { %s3156_s0 = sld [smem:[#allocation9_spill]] }
 0xbd8   : > { %s31_s29 = sadd.s32 1, %s3156_s0  }
 0xbd9   : > { %p28_p6 = scmp.ge.s32.totalorder %s31_s29, 4  }
 0xbdb   :  { %30 = sbr.rel (!%p28_p6) target bundleno = 8 (0x8), region = 161 }

</bundles_post_ra>
